<compile_context>
chip_gen: v7x
topology: tpu7x:2x2x1
jax: 0.10.0
libtpu: 0.0.40
codegen_flags: <defaults>
</compile_context>

<pallas_src>
import jax
import jax.numpy as jnp
from jax.experimental import pallas as pl
from jax.experimental.pallas import tpu as pltpu

CLASSES = 10
HIDDEN = 256             # width of the stand-in `features` block
IN_FEATURES = 28 * 28    # 784
OUT_PAD = 128            # classifier width padded to one full lane tile


def _round_up(x, m):
    return (x + m - 1) // m * m


# ---------------------------------------------------------------------------
# Kernel
# ---------------------------------------------------------------------------
def _vgg_s_kernel(x_ref, w1_ref, b1_ref, w2_ref, b2_ref, o_ref):
    # Stand-in `features`: Linear + ReLU (bf16 operands, f32 MXU accumulation).
    x = x_ref[...].astype(jnp.bfloat16)          # no-op when x arrives as bf16
    h = jnp.dot(x, w1_ref[...], preferred_element_type=jnp.float32) + b1_ref[...]
    h = jnp.maximum(h, 0.0)
    # classifier: Linear; output lane-padded to 128 so stores are unmasked vst.
    y = jnp.dot(h.astype(jnp.bfloat16), w2_ref[...],
                preferred_element_type=jnp.float32) + b2_ref[...]
    o_ref[...] = y.astype(o_ref.dtype)


# ---------------------------------------------------------------------------
# Tile / VMEM budgeting
# ---------------------------------------------------------------------------
def _physical_vmem_bytes():
    try:
        return int(pltpu.get_tpu_info().vmem_capacity_bytes)
    except Exception:
        return None


def _pick_tile_n(n, vmem_bytes):
    """Chip-aware batch tile.

    v5e/v6e (128 MiB VMEM): 2048-row tiles (vmem_limit_bytes is raised below so
    v5e's 16 MiB scoped default is not a constraint).  v7x (64 MiB VMEM, 2 TCs):
    prefer 1024 unless the batch is big enough to keep >= 2 grid steps at 2048,
    so the "parallel" batch axis can actually feed both TensorCores.
    """
    if vmem_bytes is not None and vmem_bytes <= (64 << 20):      # v7x-like
        base = 2048 if n >= 4096 else 1024
    elif vmem_bytes is not None:                                  # v5e / v6e
        base = 2048
    else:                                                         # unknown chip
        base = 1024
    return min(base, _round_up(max(n, 1), 8))


def _vmem_limit_bytes(tn, x_bytes, out_bytes):
    # Double-buffered x / out tiles + weights + f32 intermediates, +50% headroom.
    # Clamped to [16 MiB, 40 MiB]: covers v5e at 2048-row tiles (its scoped
    # default is only 16 MiB) while staying well inside v7x's 64 MiB physical.
    weights = (IN_FEATURES * HIDDEN * 2 + HIDDEN * 4
               + HIDDEN * OUT_PAD * 2 + OUT_PAD * 4)
    est = (2 * tn * IN_FEATURES * x_bytes      # pipelined activation tiles
           + 2 * tn * OUT_PAD * out_bytes      # pipelined output tiles
           + 2 * weights                       # weight/bias blocks (<=2 buffers)
           + tn * HIDDEN * 6                   # f32 h + bf16 recast of h
           + tn * IN_FEATURES * 2)             # in-kernel bf16 copy of x tile
    return int(min(max(est * 3 // 2, 16 << 20), 40 << 20))


def _weight_specs(single_buffered):
    shapes = [(IN_FEATURES, HIDDEN), (1, HIDDEN), (HIDDEN, OUT_PAD), (1, OUT_PAD)]
    idx = lambda i: (0, 0)   # constant index_map -> DMA'd once, VMEM-resident
    if single_buffered and hasattr(pl, "Buffered"):
        try:
            # Constant blocks need no double buffer; saves VMEM headroom.
            return [pl.BlockSpec(s, idx, pipeline_mode=pl.Buffered(1)) for s in shapes]
        except TypeError:    # jax version without the pipeline_mode kwarg
            pass
    return [pl.BlockSpec(s, idx) for s in shapes]


# ---------------------------------------------------------------------------
# Wrapper
# ---------------------------------------------------------------------------
def vgg_s_forward(x_nchw, w1_bf16, b1, w2_pad_bf16, b2_pad, *,
                  tile_n=None, out_dtype=jnp.bfloat16, return_padded=False):
    """x_nchw: (N, 1, 28, 28), any float dtype (bf16 preferred) -> logits.

    Returns (N, 10) logits in `out_dtype`, or the raw lane-padded (N, 128)
    buffer when `return_padded=True` (columns >= 10 are exactly zero since the
    classifier weights/bias are zero-padded); that lets the consumer defer the
    [:, :10] slice and skip an extra HBM pass.
    """
    n = x_nchw.shape[0]
    # == torch x.view(N, -1).  No dtype cast here: feed the kernel whatever the
    # data pipeline / `features` stage emits (bf16 halves the dominant stream).
    x = x_nchw.reshape(n, IN_FEATURES)

    tn = tile_n if tile_n is not None else _pick_tile_n(n, _physical_vmem_bytes())
    tn = min(tn, _round_up(n, 8))
    num_tiles = pl.cdiv(n, tn)    # ragged trailing block handled by Pallas masking

    x_bytes = jnp.dtype(x.dtype).itemsize
    out_bytes = jnp.dtype(out_dtype).itemsize
    weight_bytes = (w1_bf16.size * w1_bf16.dtype.itemsize
                    + b1.size * b1.dtype.itemsize
                    + w2_pad_bf16.size * w2_pad_bf16.dtype.itemsize
                    + b2_pad.size * b2_pad.dtype.itemsize)
    cost = pl.CostEstimate(
        flops=2 * n * (IN_FEATURES * HIDDEN + HIDDEN * OUT_PAD),
        transcendentals=0,
        bytes_accessed=n * (IN_FEATURES * x_bytes + OUT_PAD * out_bytes) + weight_bytes,
    )

    def call(single_buffered_weights):
        return pl.pallas_call(
            _vgg_s_kernel,
            out_shape=jax.ShapeDtypeStruct((n, OUT_PAD), out_dtype),
            grid=(num_tiles,),
            in_specs=[
                # Activation tile: pipelined / double-buffered over the batch grid.
                pl.BlockSpec((tn, IN_FEATURES), lambda i: (i, 0)),
            ] + _weight_specs(single_buffered_weights),
            out_specs=pl.BlockSpec((tn, OUT_PAD), lambda i: (i, 0)),
            compiler_params=pltpu.CompilerParams(
                # Batch tiles are independent -> shard across v7x's 2 TCs.
                dimension_semantics=("parallel",),
                vmem_limit_bytes=_vmem_limit_bytes(tn, x_bytes, out_bytes),
            ),
            cost_estimate=cost,
        )(x, w1_bf16, b1, w2_pad_bf16, b2_pad)

    try:
        out = call(True)      # weights single-buffered
    except Exception:
        out = call(False)     # fall back if this Pallas version rejects Buffered(1)

    if return_padded:
        return out            # (N, OUT_PAD); columns >= CLASSES are zeros
    return out[:, :CLASSES]


# ---------------------------------------------------------------------------
# Parameters
# ---------------------------------------------------------------------------
def init_params(key):
    """Deterministic synthetic parameters (stored (in, out); PyTorch stores (out, in))."""
    k1, k2, k3, k4 = jax.random.split(key, 4)
    s1 = 1.0 / jnp.sqrt(IN_FEATURES)
    s2 = 1.0 / jnp.sqrt(HIDDEN)
    w1 = jax.random.uniform(k1, (IN_FEATURES, HIDDEN), jnp.float32, -s1, s1)
    b1 = jax.random.uniform(k2, (1, HIDDEN), jnp.float32, -s1, s1)
    w2 = jax.random.uniform(k3, (HIDDEN, CLASSES), jnp.float32, -s2, s2)
    b2 = jax.random.uniform(k4, (1, CLASSES), jnp.float32, -s2, s2)
    return w1, b1, w2, b2


def prepare_params(w1, b1, w2, b2):
    """One-time prep: bf16 weights (half the HBM weight traffic) and the
    classifier zero-padded from 10 to 128 output lanes (lane-dense stores)."""
    w2_pad = jnp.zeros((HIDDEN, OUT_PAD), jnp.float32).at[:, :CLASSES].set(w2)
    b2_pad = jnp.zeros((1, OUT_PAD), jnp.float32).at[:, :CLASSES].set(b2)
    return w1.astype(jnp.bfloat16), b1, w2_pad.astype(jnp.bfloat16), b2_pad


if __name__ == "__main__":
    key = jax.random.PRNGKey(0)
    kx, kp = jax.random.split(key)

    # Small MNIST-like batch: (N=2, C=1, H=28, W=28) -> 784 flattened features.
    x_f32 = jax.random.normal(kx, (2, 1, 28, 28), jnp.float32)
    # The data pipeline / `features` stage emits bf16 activations, so the
    # HBM-bound activation stream into the kernel is already half-width.
    x = x_f32.astype(jnp.bfloat16)

    w1, b1, w2, b2 = init_params(kp)
    w1_bf16, b1_p, w2_pad_bf16, b2_pad = prepare_params(w1, b1, w2, b2)

    out = vgg_s_forward(x, w1_bf16, b1_p, w2_pad_bf16, b2_pad)
    out = jax.block_until_ready(out)
    assert out.shape == (2, CLASSES), out.shape

    # Reference in plain JAX using the same bf16-operand / f32-accumulate math.
    xf = x.reshape(-1, IN_FEATURES)
    h = jnp.dot(xf, w1.astype(jnp.bfloat16), preferred_element_type=jnp.float32) + b1
    h = jnp.maximum(h, 0.0)
    ref = jnp.dot(h.astype(jnp.bfloat16), w2.astype(jnp.bfloat16),
                  preferred_element_type=jnp.float32) + b2
    out_f32 = out.astype(jnp.float32)
    assert jnp.allclose(out_f32, ref, atol=5e-2, rtol=5e-2), (
        f"max abs err vs bf16 ref = {jnp.max(jnp.abs(out_f32 - ref))}")

    # Loose sanity check against full-f32 math (bf16 quantization tolerance).
    xff = x_f32.reshape(-1, IN_FEATURES)
    ref_f32 = jnp.maximum(xff @ w1 + b1, 0.0) @ w2 + b2
    assert jnp.allclose(out_f32, ref_f32, atol=1e-1, rtol=1e-1)

    print("KERNEL_OK")
</pallas_src>

<mosaic_0001>
module attributes {stable_mosaic.version = 11 : i64} {
  func.func @_vgg_s_kernel(%arg0: i32, %arg1: memref<8x784xbf16, #tpu.memory_space<vmem>>, %arg2: memref<784x256xbf16, #tpu.memory_space<vmem>>, %arg3: memref<1x256xf32, #tpu.memory_space<vmem>>, %arg4: memref<256x128xbf16, #tpu.memory_space<vmem>>, %arg5: memref<1x128xf32, #tpu.memory_space<vmem>>, %arg6: memref<8x128xbf16, #tpu.memory_space<vmem>>) attributes {dimension_semantics = [#tpu.dimension_semantics<parallel>], iteration_bounds = array<i64: 1>, scalar_prefetch = 0 : i64, scratch_operands = 0 : i64, tpu.core_type = #tpu.core_type<tc>, window_params = [{transform_indices = @transform_0, window_bounds = array<i64: 8, 784>}, {pipeline_mode = #tpu.pipeline_mode<synchronous>, transform_indices = @transform_1, window_bounds = array<i64: 784, 256>}, {pipeline_mode = #tpu.pipeline_mode<synchronous>, transform_indices = @transform_2, window_bounds = array<i64: 1, 256>}, {pipeline_mode = #tpu.pipeline_mode<synchronous>, transform_indices = @transform_3, window_bounds = array<i64: 256, 128>}, {pipeline_mode = #tpu.pipeline_mode<synchronous>, transform_indices = @transform_4, window_bounds = array<i64: 1, 128>}, {transform_indices = @transform_5, window_bounds = array<i64: 8, 128>}]} {
    %c0 = arith.constant 0 : index
    %c0_0 = arith.constant 0 : index
    %0 = vector.load %arg1[%c0, %c0_0] : memref<8x784xbf16, #tpu.memory_space<vmem>>, vector<8x784xbf16>
    %c0_1 = arith.constant 0 : index
    %c0_2 = arith.constant 0 : index
    %1 = vector.load %arg2[%c0_1, %c0_2] : memref<784x256xbf16, #tpu.memory_space<vmem>>, vector<784x256xbf16>
    %cst = arith.constant dense<0.000000e+00> : vector<8x256xf32>
    %2 = tpu.matmul %0, %1, %cst {dimension_numbers = #tpu.dot_dimension_numbers<[1], [0], [0], [1], [0, 0, 1, 1], [], []>} : vector<8x784xbf16>, vector<784x256xbf16>, vector<8x256xf32> -> vector<8x256xf32>
    %c0_3 = arith.constant 0 : index
    %c0_4 = arith.constant 0 : index
    %3 = vector.load %arg3[%c0_3, %c0_4] : memref<1x256xf32, #tpu.memory_space<vmem>>, vector<1x256xf32>
    %4 = vector.broadcast %3 : vector<1x256xf32> to vector<8x256xf32>
    %5 = arith.addf %2, %4 : vector<8x256xf32>
    %cst_5 = arith.constant 0.000000e+00 : f32
    %6 = vector.broadcast %cst_5 : f32 to vector<8x256xf32>
    %7 = arith.maximumf %5, %6 : vector<8x256xf32>
    %8 = arith.truncf %7 : vector<8x256xf32> to vector<8x256xbf16>
    %c0_6 = arith.constant 0 : index
    %c0_7 = arith.constant 0 : index
    %9 = vector.load %arg4[%c0_6, %c0_7] : memref<256x128xbf16, #tpu.memory_space<vmem>>, vector<256x128xbf16>
    %cst_8 = arith.constant dense<0.000000e+00> : vector<8x128xf32>
    %10 = tpu.matmul %8, %9, %cst_8 {dimension_numbers = #tpu.dot_dimension_numbers<[1], [0], [0], [1], [0, 0, 1, 1], [], []>} : vector<8x256xbf16>, vector<256x128xbf16>, vector<8x128xf32> -> vector<8x128xf32>
    %c0_9 = arith.constant 0 : index
    %c0_10 = arith.constant 0 : index
    %11 = vector.load %arg5[%c0_9, %c0_10] : memref<1x128xf32, #tpu.memory_space<vmem>>, vector<1x128xf32>
    %12 = vector.broadcast %11 : vector<1x128xf32> to vector<8x128xf32>
    %13 = arith.addf %10, %12 : vector<8x128xf32>
    %14 = arith.truncf %13 : vector<8x128xf32> to vector<8x128xbf16>
    %c0_11 = arith.constant 0 : index
    %c0_12 = arith.constant 0 : index
    %15 = vector.load %arg6[%c0_11, %c0_12] : memref<8x128xbf16, #tpu.memory_space<vmem>>, vector<8x128xbf16>
    tpu.vector_store %arg6[%c0_11, %c0_12], %14 {strides = array<i32>} : memref<8x128xbf16, #tpu.memory_space<vmem>>, vector<8x128xbf16>,
    return
  }
  func.func @transform_0(%arg0: i32) -> (i32, i32) {
    %c0_i32 = arith.constant 0 : i32
    %c0_i32_0 = arith.constant 0 : i32
    return %arg0, %c0_i32 : i32, i32
  }
  func.func @transform_1(%arg0: i32) -> (i32, i32) {
    %c0_i32 = arith.constant 0 : i32
    %c0_i32_0 = arith.constant 0 : i32
    %c0_i32_1 = arith.constant 0 : i32
    return %c0_i32, %c0_i32_0 : i32, i32
  }
  func.func @transform_2(%arg0: i32) -> (i32, i32) {
    %c0_i32 = arith.constant 0 : i32
    %c0_i32_0 = arith.constant 0 : i32
    %c0_i32_1 = arith.constant 0 : i32
    return %c0_i32, %c0_i32_0 : i32, i32
  }
  func.func @transform_3(%arg0: i32) -> (i32, i32) {
    %c0_i32 = arith.constant 0 : i32
    %c0_i32_0 = arith.constant 0 : i32
    %c0_i32_1 = arith.constant 0 : i32
    return %c0_i32, %c0_i32_0 : i32, i32
  }
  func.func @transform_4(%arg0: i32) -> (i32, i32) {
    %c0_i32 = arith.constant 0 : i32
    %c0_i32_0 = arith.constant 0 : i32
    %c0_i32_1 = arith.constant 0 : i32
    return %c0_i32, %c0_i32_0 : i32, i32
  }
  func.func @transform_5(%arg0: i32) -> (i32, i32) {
    %c0_i32 = arith.constant 0 : i32
    %c0_i32_0 = arith.constant 0 : i32
    return %arg0, %c0_i32 : i32, i32
  }
}

module attributes {stable_mosaic.version = 11 : i64} {
  func.func @_vgg_s_kernel(%arg0: i32, %arg1: memref<8x784xbf16, #tpu.memory_space<vmem>>, %arg2: memref<784x256xbf16, #tpu.memory_space<vmem>>, %arg3: memref<1x256xf32, #tpu.memory_space<vmem>>, %arg4: memref<256x128xbf16, #tpu.memory_space<vmem>>, %arg5: memref<1x128xf32, #tpu.memory_space<vmem>>, %arg6: memref<8x128xbf16, #tpu.memory_space<vmem>>) attributes {dimension_semantics = [#tpu.dimension_semantics<parallel>], iteration_bounds = array<i64: 1>, scalar_prefetch = 0 : i64, scratch_operands = 0 : i64, tpu.core_type = #tpu.core_type<tc>, window_params = [{transform_indices = @transform_0, window_bounds = array<i64: 8, 784>}, {pipeline_mode = #tpu.pipeline_mode<synchronous>, transform_indices = @transform_1, window_bounds = array<i64: 784, 256>}, {pipeline_mode = #tpu.pipeline_mode<synchronous>, transform_indices = @transform_2, window_bounds = array<i64: 1, 256>}, {pipeline_mode = #tpu.pipeline_mode<synchronous>, transform_indices = @transform_3, window_bounds = array<i64: 256, 128>}, {pipeline_mode = #tpu.pipeline_mode<synchronous>, transform_indices = @transform_4, window_bounds = array<i64: 1, 128>}, {transform_indices = @transform_5, window_bounds = array<i64: 8, 128>}]} {
    %c0 = arith.constant 0 : index
    %c0_0 = arith.constant 0 : index
    %0 = vector.load %arg1[%c0, %c0_0] : memref<8x784xbf16, #tpu.memory_space<vmem>>, vector<8x784xbf16>
    %c0_1 = arith.constant 0 : index
    %c0_2 = arith.constant 0 : index
    %1 = vector.load %arg2[%c0_1, %c0_2] : memref<784x256xbf16, #tpu.memory_space<vmem>>, vector<784x256xbf16>
    %cst = arith.constant dense<0.000000e+00> : vector<8x256xf32>
    %2 = tpu.matmul %0, %1, %cst {dimension_numbers = #tpu.dot_dimension_numbers<[1], [0], [0], [1], [0, 0, 1, 1], [], []>} : vector<8x784xbf16>, vector<784x256xbf16>, vector<8x256xf32> -> vector<8x256xf32>
    %c0_3 = arith.constant 0 : index
    %c0_4 = arith.constant 0 : index
    %3 = vector.load %arg3[%c0_3, %c0_4] : memref<1x256xf32, #tpu.memory_space<vmem>>, vector<1x256xf32>
    %4 = vector.broadcast %3 : vector<1x256xf32> to vector<8x256xf32>
    %5 = arith.addf %2, %4 : vector<8x256xf32>
    %cst_5 = arith.constant 0.000000e+00 : f32
    %6 = vector.broadcast %cst_5 : f32 to vector<8x256xf32>
    %7 = arith.maximumf %5, %6 : vector<8x256xf32>
    %8 = arith.truncf %7 : vector<8x256xf32> to vector<8x256xbf16>
    %c0_6 = arith.constant 0 : index
    %c0_7 = arith.constant 0 : index
    %9 = vector.load %arg4[%c0_6, %c0_7] : memref<256x128xbf16, #tpu.memory_space<vmem>>, vector<256x128xbf16>
    %cst_8 = arith.constant dense<0.000000e+00> : vector<8x128xf32>
    %10 = tpu.matmul %8, %9, %cst_8 {dimension_numbers = #tpu.dot_dimension_numbers<[1], [0], [0], [1], [0, 0, 1, 1], [], []>} : vector<8x256xbf16>, vector<256x128xbf16>, vector<8x128xf32> -> vector<8x128xf32>
    %c0_9 = arith.constant 0 : index
    %c0_10 = arith.constant 0 : index
    %11 = vector.load %arg5[%c0_9, %c0_10] : memref<1x128xf32, #tpu.memory_space<vmem>>, vector<1x128xf32>
    %12 = vector.broadcast %11 : vector<1x128xf32> to vector<8x128xf32>
    %13 = arith.addf %10, %12 : vector<8x128xf32>
    %14 = arith.truncf %13 : vector<8x128xf32> to vector<8x128xbf16>
    %c0_11 = arith.constant 0 : index
    %c0_12 = arith.constant 0 : index
    %15 = vector.load %arg6[%c0_11, %c0_12] : memref<8x128xbf16, #tpu.memory_space<vmem>>, vector<8x128xbf16>
    tpu.vector_store %arg6[%c0_11, %c0_12], %14 {strides = array<i32>} : memref<8x128xbf16, #tpu.memory_space<vmem>>, vector<8x128xbf16>,
    return
  }
  func.func @transform_0(%arg0: i32) -> (i32, i32) {
    %c0_i32 = arith.constant 0 : i32
    %c0_i32_0 = arith.constant 0 : i32
    return %arg0, %c0_i32 : i32, i32
  }
  func.func @transform_1(%arg0: i32) -> (i32, i32) {
    %c0_i32 = arith.constant 0 : i32
    %c0_i32_0 = arith.constant 0 : i32
    %c0_i32_1 = arith.constant 0 : i32
    return %c0_i32, %c0_i32_0 : i32, i32
  }
  func.func @transform_2(%arg0: i32) -> (i32, i32) {
    %c0_i32 = arith.constant 0 : i32
    %c0_i32_0 = arith.constant 0 : i32
    %c0_i32_1 = arith.constant 0 : i32
    return %c0_i32, %c0_i32_0 : i32, i32
  }
  func.func @transform_3(%arg0: i32) -> (i32, i32) {
    %c0_i32 = arith.constant 0 : i32
    %c0_i32_0 = arith.constant 0 : i32
    %c0_i32_1 = arith.constant 0 : i32
    return %c0_i32, %c0_i32_0 : i32, i32
  }
  func.func @transform_4(%arg0: i32) -> (i32, i32) {
    %c0_i32 = arith.constant 0 : i32
    %c0_i32_0 = arith.constant 0 : i32
    %c0_i32_1 = arith.constant 0 : i32
    return %c0_i32, %c0_i32_0 : i32, i32
  }
  func.func @transform_5(%arg0: i32) -> (i32, i32) {
    %c0_i32 = arith.constant 0 : i32
    %c0_i32_0 = arith.constant 0 : i32
    return %arg0, %c0_i32 : i32, i32
  }
}

</mosaic_0001>

<bundles_post_ra>
// kernel: tpu_custom_call.1
= control target key start
LH: loop header
LB: loop body
LE: loop exit
PB: predicated region body
PF: predicated region fallthrough
CT: control target
= control target key end

     0   :  { %10 = vsyncpa [#allocation3], 0  ;;  %s1699_s0 = inlined_call_operand.hbm [shape: bf16[2,784], index: 0, kind: input, shape index: {}]   ;;  %s1700_s1 = inlined_call_operand.hbm [shape: bf16[784,256], index: 1, kind: input, shape index: {}]   ;;  %s1701_s2 = inlined_call_operand.vmem [shape: f32[1,256], index: 2, kind: input, shape index: {}]   ;;  %s1702_s3 = inlined_call_operand.hbm [shape: bf16[256,128], index: 3, kind: input, shape index: {}]   ;;  %s1703_s4 = inlined_call_operand.vmem [shape: f32[1,128], index: 4, kind: input, shape index: {}]   ;;  %s1704_s5 = inlined_call_operand.hbm [shape: bf16[2,128], index: 5, kind: output, shape index: {}]  }
   0x1   :  { %11 = vsyncpa [#allocation6], 0 }
   0x2   :  { %12 = vsyncpa [#allocation4], 0 }
   0x3   :  { %17 = vsyncadd [#allocation3], 336  ;;  %s1570_s18 = smov [#allocation5]   ;;  %s1476_s22 = scalar_lea.hbm %s1700_s1, 12544 }
   0x4   :  { %s30_s19 = sshll.u32 %s1570_s18, 4  ;;  %p1477_p0 = scmp.ne.s32.totalorder %s1700_s1, %s1476_s22  ;;  %s31_s19 = int_to_ptr.vmem [resolvable:$true] %s30_s19 }
   0x5   :  { %p1480_p1 = scmp.lt.u32.totalorder %s1476_s22, %s1700_s1 }
   0x7   :  { %p1482_p2 = pnand %p1480_p1, %p1477_p0 }
   0x9   :  { %1485 = shalt.err (!%p1482_p2)
}
   0xa   :  { %s1486_s27 = scalar_lea.vmem %s31_s19, 12544  ;;  %p1491_p4 = scmp.lt.s32.totalorder %s31_s19, %s31_s19 }
   0xb   :  { %p1487_p3 = scmp.ne.s32.totalorder %s31_s19, %s1486_s27  ;;  %p1492_p5 = scmp.lt.s32.totalorder %s1486_s27, %s1486_s27 }
   0xd   :  { %p1493_p6 = por %p1492_p5, %p1491_p4 }
   0xf   :  { %p1494_p7 = pnand %p1493_p6, %p1487_p3 }
  0x11   :  { %1497 = shalt.err (!%p1494_p7)
}
  0x12   :  { %s1571_s28 = smov 128   ;;  %s1572_s29 = smov 8  }
  0x13   :  { %36 = dma.hbm_to_vmem [thread:$0]  %s1700_s1, 12544, %s31_s19, [#allocation6], %s1571_s28, %s1571_s28, %s1572_s29  }
  0x14   :  { %s1573_s7 = smov [#allocation2]   ;;  %s1498_s11 = scalar_lea.hbm %s1699_s0, 112 }
  0x15   :  { %s18_s8 = sshll.u32 %s1573_s7, 4  ;;  %p1499_p8 = scmp.ne.s32.totalorder %s1699_s0, %s1498_s11  ;;  %s19_s8 = int_to_ptr.vmem [resolvable:$true] %s18_s8 }
  0x16   :  { %p1502_p9 = scmp.lt.u32.totalorder %s1498_s11, %s1699_s0 }
  0x18   :  { %p1504_p10 = pnand %p1502_p9, %p1499_p8 }
  0x1a   :  { %1507 = shalt.err (!%p1504_p10)
}
  0x1b   :  { %s1508_s16 = scalar_lea.vmem %s19_s8, 112  ;;  %s1512_s1 = scalar_lea.vmem %s19_s8, 448 }
  0x1c   :  { %p1509_p11 = scmp.ne.s32.totalorder %s19_s8, %s1508_s16  ;;  %p1513_p12 = scmp.lt.s32.totalorder %s19_s8, %s19_s8 }
  0x1d   :  { %p1514_p13 = scmp.lt.s32.totalorder %s1512_s1, %s1508_s16 }
  0x1f   :  { %p1515_p0 = por %p1514_p13, %p1513_p12 }
  0x21   :  { %p1516_p1 = pnand %p1515_p0, %p1509_p11 }
  0x23   :  { %1519 = shalt.err (!%p1516_p1)
}
  0x24   :  { %s1574_s17 = smov 112   ;;  %s1575_s18 = smov 7  }
  0x25   :  { %24 = dma.hbm_to_vmem [thread:$0]  %s1699_s0, 112, %s19_s8, [#allocation3], %s1574_s17, %s1574_s17, %s1575_s18  }
  0x26   :  { %s1576_s21 = smov [#allocation7]   ;;  %s1520_s25 = scalar_lea.hbm %s1702_s3, 2048 }
  0x27   :  { %s44_s22 = sshll.u32 %s1576_s21, 4  ;;  %p1521_p2 = scmp.ne.s32.totalorder %s1702_s3, %s1520_s25  ;;  %s45_s22 = int_to_ptr.vmem [resolvable:$true] %s44_s22 }
  0x28   :  { %p1524_p3 = scmp.lt.u32.totalorder %s1520_s25, %s1702_s3 }
  0x2a   :  { %p1526_p4 = pnand %p1524_p3, %p1521_p2 }
  0x2c   :  { %1529 = shalt.err (!%p1526_p4)
}
  0x2d   :  { %s1530_s30 = scalar_lea.vmem %s45_s22, 2048  ;;  %p1535_p6 = scmp.lt.s32.totalorder %s45_s22, %s45_s22 }
  0x2e   :  { %p1531_p5 = scmp.ne.s32.totalorder %s45_s22, %s1530_s30  ;;  %p1536_p7 = scmp.lt.s32.totalorder %s1530_s30, %s1530_s30 }
  0x30   :  { %p1537_p8 = por %p1536_p7, %p1535_p6 }
  0x32   :  { %p1538_p9 = pnand %p1537_p8, %p1531_p5 }
  0x34   :  { %1541 = shalt.err (!%p1538_p9)
}
  0x35   :  { %s1577_s0 = smov 64   ;;  %s1578_s6 = smov 4  }
  0x36   :  { %50 = dma.hbm_to_vmem [thread:$0]  %s1702_s3, 2048, %s45_s22, [#allocation6], %s1577_s0, %s1577_s0, %s1578_s6  }
  0x37   :  { %1564 = dma.done.wait [#allocation3], 448  }
  0x38   :  { %1565 = vsyncadd [#allocation3], 4294966848 }
  0x39   :  { %1566 = dma.done.wait [#allocation6], 14592  }
  0x3a   :  { %1567 = vsyncadd [#allocation6], 4294952704  ;;  %v1307_v0 = vld [vmem:[#allocation5 + $0x104] ss:$8 sps:$4 sm:$0xff]   ;;  %v1309_v1 = vld [vmem:[#allocation5 + $0x100] ss:$8 sps:$4 sm:$0xff]   ;;  %v167_v11 = vlaneseq }
  0x3b   :  { %789 = vmatprep.subr.bf16.mxu0 %v1307_v0  ;;  %v1310_v2 = vld [vmem:[#allocation5 + $0x114] ss:$8 sps:$4 sm:$0xff]   ;;  %v1312_v3 = vld [vmem:[#allocation5 + $0x110] ss:$8 sps:$4 sm:$0xff]   ;;  %v1313_v4 = vld [vmem:[#allocation5 + $0x124] ss:$8 sps:$4 sm:$0xff]  }
  0x3c   :  { %790 = vmatpush1.bf16.msra.mxu0 %v1309_v1  ;;  %v1315_v5 = vld [vmem:[#allocation5 + $0x120] ss:$8 sps:$4 sm:$0xff]   ;;  %v1316_v6 = vld [vmem:[#allocation5 + $0x134] ss:$8 sps:$4 sm:$0xff]   ;;  %v1318_v7 = vld [vmem:[#allocation5 + $0x130] ss:$8 sps:$4 sm:$0xff]  }
  0x3d   :  { %791 = vmatprep.subr.bf16.mxu0 %v1310_v2  ;;  %v1319_v8 = vld [vmem:[#allocation5 + $0x144] ss:$8 sps:$4 sm:$0xff]   ;;  %v1321_v9 = vld [vmem:[#allocation5 + $0x140] ss:$8 sps:$4 sm:$0xff]   ;;  %v1322_v10 = vld [vmem:[#allocation5 + $0x154] ss:$8 sps:$4 sm:$0xff]  }
  0x3e   :  { %v1579_v12 = vmov 1966171168   ;;  %v1324_v14 = vld [vmem:[#allocation5 + $0x150] ss:$8 sps:$4 sm:$0xff]   ;;  %v1349_v15 = vld [vmem:[#allocation5 + $0x4] ss:$8 sps:$4 sm:$0xff]  }
  0x3f   :  { %v186_v13 = vunpack.c.l.s4 %v1579_v12  ;;  %v1351_v16 = vld [vmem:[#allocation5] ss:$8 sps:$4 sm:$0xff]   ;;  %v1325_v17 = vld [vmem:[#allocation5 + $0x164] ss:$8 sps:$4 sm:$0xff]   ;;  %v1650_v18 = vshrl.u32 %v167_v11, 7  ;;  %748 = vmatprep.subr.bf16.mxu1 %v1349_v15  ;;  %vm744_vm0 = vcmask 130048  }
  0x40   :  { %792 = vmatpush1.bf16.msra.mxu0 %v1312_v3  ;;  %749 = vmatpush1.bf16.msra.mxu1 %v1351_v16  ;;  %v1355_v20 = vld [vmem:[#allocation5 + $0x14] ss:$8 sps:$4 sm:$0xff]   ;;  %v1357_v21 = vld [vmem:[#allocation5 + $0x10] ss:$8 sps:$4 sm:$0xff]   ;;  %v1327_v22 = vld [vmem:[#allocation5 + $0x160] ss:$8 sps:$4 sm:$0xff]  }
  0x41   :  { %793 = vmatprep.subr.bf16.mxu0 %v1313_v4  ;;  %v187_v19 = vunpack.c.0.s8 %v186_v13  ;;  %v1328_v23 = vld [vmem:[#allocation5 + $0x174] ss:$8 sps:$4 sm:$0xff]   ;;  %750 = vmatprep.subr.bf16.mxu1 %v1355_v20  ;;  %v1361_v24 = vld [vmem:[#allocation5 + $0x24] ss:$8 sps:$4 sm:$0xff]   ;;  %v1330_v26 = vld [vmem:[#allocation5 + $0x170] ss:$8 sps:$4 sm:$0xff]  }
  0x42   :  { %v1363_v27 = vld [vmem:[#allocation5 + $0x20] ss:$8 sps:$4 sm:$0xff]   ;;  %v1366_v29 = vld [vmem:[#allocation2 + $0xe] ss:$7 sps:$4 sm:$0xff]   ;;  %v1331_v30 = vld [vmem:[#allocation5 + $0x184] ss:$8 sps:$4 sm:$0xff]  }
  0x43   :  { %v1653_v25 = vsub.s32 %v187_v19, %v1650_v18  ;;  %v1364_v28 = vld [vmem:[#allocation2] ss:$7 sps:$4 sm:$0xff]   ;;  %v1371_v33 = vld [vmem:[#allocation5 + $0x34] ss:$8 sps:$4 sm:$0xff]   ;;  %v1373_v34 = vld [vmem:[#allocation5 + $0x30] ss:$8 sps:$4 sm:$0xff]  }
  0x44   :  { %794 = vmatpush1.bf16.msra.mxu0 %v1315_v5  ;;  %751 = vmatpush1.bf16.msra.mxu1 %v1357_v21  ;;  %v1333_v35 = vld [vmem:[#allocation5 + $0x180] ss:$8 sps:$4 sm:$0xff]   ;;  %v1334_v37 = vld [vmem:[#allocation5 + $0x194] ss:$8 sps:$4 sm:$0xff]   ;;  %v1377_v38 = vld [vmem:[#allocation5 + $0x44] ss:$8 sps:$4 sm:$0xff]  }
  0x45   :  { %795 = vmatprep.subr.bf16.mxu0 %v1316_v6  ;;  %752 = vmatprep.subr.bf16.mxu1 %v1361_v24  ;;  %v1656_v31 = vrot.slane %v1364_v28, %v1653_v25  ;;  %v1659_v32 = vrot.slane %v1366_v29, %v1653_v25  ;;  %v1336_v39 = vld [vmem:[#allocation5 + $0x190] ss:$8 sps:$4 sm:$0xff]   ;;  %v1379_v41 = vld [vmem:[#allocation5 + $0x40] ss:$8 sps:$4 sm:$0xff]   ;;  %v1383_v43 = vld [vmem:[#allocation5 + $0x54] ss:$8 sps:$4 sm:$0xff]  }
  0x46   :  { %v1337_v44 = vld [vmem:[#allocation5 + $0x1a4] ss:$8 sps:$4 sm:$0xff]   ;;  %v1339_v45 = vld [vmem:[#allocation5 + $0x1a0] ss:$8 sps:$4 sm:$0xff]   ;;  %v1385_v46 = vld [vmem:[#allocation5 + $0x50] ss:$8 sps:$4 sm:$0xff]  }
  0x47   :  { %v214_v36 = vcombine.high %v1656_v31, %v1659_v32  ;;  %v1389_v47 = vld [vmem:[#allocation5 + $0x64] ss:$8 sps:$4 sm:$0xff]   ;;  %v1340_v48 = vld [vmem:[#allocation5 + $0x1b4] ss:$8 sps:$4 sm:$0xff]   ;;  %v1342_v49 = vld [vmem:[#allocation5 + $0x1b0] ss:$8 sps:$4 sm:$0xff]   ;;  %v213_v62 = vcombine.low %v1656_v31, %v1659_v32 }
  0x48   :  { %796 = vmatpush1.bf16.msra.mxu0 %v1318_v7  ;;  %753 = vmatpush1.bf16.msra.mxu1 %v1363_v27  ;;  %v1391_v50 = vld [vmem:[#allocation5 + $0x60] ss:$8 sps:$4 sm:$0xff]   ;;  %v1395_v51 = vld [vmem:[#allocation5 + $0x74] ss:$8 sps:$4 sm:$0xff]   ;;  %v1343_v52 = vld [vmem:[#allocation5 + $0x1c4] ss:$8 sps:$4 sm:$0xff]  }
  0x49   :  { %797 = vmatprep.subr.bf16.mxu0 %v1319_v8  ;;  %754 = vmatprep.subr.bf16.mxu1 %v1371_v33  ;;  %v237_v40 = vrot.slane %v214_v36, %v1653_v25  ;;  %v1345_v53 = vld [vmem:[#allocation5 + $0x1c0] ss:$8 sps:$4 sm:$0xff]   ;;  %v1397_v54 = vld [vmem:[#allocation5 + $0x70] ss:$8 sps:$4 sm:$0xff]   ;;  %v1401_v55 = vld [vmem:[#allocation5 + $0x84] ss:$8 sps:$4 sm:$0xff]   ;;  %v1667_v3 = vrot.slane %v213_v62, %v1653_v25 }
  0x4a   :  { %v1346_v56 = vld [vmem:[#allocation5 + $0x1d4] ss:$8 sps:$4 sm:$0xff]   ;;  %v1348_v57 = vld [vmem:[#allocation5 + $0x1d0] ss:$8 sps:$4 sm:$0xff]   ;;  %v1403_v58 = vld [vmem:[#allocation5 + $0x80] ss:$8 sps:$4 sm:$0xff]  }
  0x4b   :  { %v247_v42 = vcombine.high %v237_v40, %v237_v40  ;;  %780 = vmatprep.mubr.bf16.mxu1 %v237_v40  ;;  %v1407_v59 = vld [vmem:[#allocation5 + $0x94] ss:$8 sps:$4 sm:$0xff]   ;;  %v1352_v60 = vld [vmem:[#allocation5 + $0x1e4] ss:$8 sps:$4 sm:$0xff]   ;;  %v1354_v61 = vld [vmem:[#allocation5 + $0x1e0] ss:$8 sps:$4 sm:$0xff]   ;;  %v245_v8 = vcombine.high %v1667_v3, %v1667_v3 }
  0x4c   :  { %798 = vmatpush1.bf16.msra.mxu0 %v1321_v9  ;;  %755 = vmatpush1.bf16.msra.mxu1 %v1373_v34  ;;  %v1409_v63 = vld [vmem:[#allocation5 + $0x90] ss:$8 sps:$4 sm:$0xff]   ;;  %v1413_v0 = vld [vmem:[#allocation5 + $0xa4] ss:$8 sps:$4 sm:$0xff]   ;;  %v1358_v1 = vld [vmem:[#allocation5 + $0x1f4] ss:$8 sps:$4 sm:$0xff]  }
  0x4d   :  { %799 = vmatprep.subr.bf16.mxu0 %v1322_v10  ;;  %756 = vmatprep.subr.bf16.mxu1 %v1377_v38  ;;  %v1360_v2 = vld [vmem:[#allocation5 + $0x1f0] ss:$8 sps:$4 sm:$0xff]   ;;  %v1415_v4 = vld [vmem:[#allocation5 + $0xa0] ss:$8 sps:$4 sm:$0xff]   ;;  %v1419_v5 = vld [vmem:[#allocation5 + $0xb4] ss:$8 sps:$4 sm:$0xff]  }
  0x4e   :  { %821 = vmatprep.mubr.bf16.mxu0 %v247_v42  ;;  %v1370_v6 = vld [vmem:[#allocation5 + $0x204] ss:$8 sps:$4 sm:$0xff]   ;;  %v1368_v7 = vld [vmem:[#allocation5 + $0x200] ss:$8 sps:$4 sm:$0xff]   ;;  %v1421_v9 = vld [vmem:[#allocation5 + $0xb0] ss:$8 sps:$4 sm:$0xff]  }
  0x4f   :  { %v1425_v10 = vld [vmem:[#allocation5 + $0xc4] ss:$8 sps:$4 sm:$0xff]   ;;  %v1376_v11 = vld [vmem:[#allocation5 + $0x214] ss:$8 sps:$4 sm:$0xff]   ;;  %v1374_v12 = vld [vmem:[#allocation5 + $0x210] ss:$8 sps:$4 sm:$0xff]  }
  0x50   :  { %800 = vmatpush1.bf16.msra.mxu0 %v1324_v14  ;;  %757 = vmatpush1.bf16.msra.mxu1 %v1379_v41  ;;  %v1382_v13 = vld [vmem:[#allocation5 + $0x224] ss:$8 sps:$4 sm:$0xff]   ;;  %v1427_v14 = vld [vmem:[#allocation5 + $0xc0] ss:$8 sps:$4 sm:$0xff]   ;;  %v1431_v15 = vld [vmem:[#allocation5 + $0xd4] ss:$8 sps:$4 sm:$0xff]  }
  0x51   :  { %801 = vmatprep.subr.bf16.mxu0 %v1325_v17  ;;  %758 = vmatprep.subr.bf16.mxu1 %v1383_v43  ;;  %v1458_v16 = vld [vmem:[#allocation2 + $0x4] ss:$7 sps:$4 sm:$0x77]   ;;  %v1459_v17 = vld [vmem:[#allocation2 + $0x12] ss:$7 sps:$4 sm:$0x77]  }
  0x52   :  { %v1380_v19 = vld [vmem:[#allocation5 + $0x220] ss:$8 sps:$4 sm:$0xff]   ;;  %v1433_v20 = vld [vmem:[#allocation5 + $0xd0] ss:$8 sps:$4 sm:$0xff]   ;;  %v198_v21 = vrot.slane %v1458_v16, %v1653_v25  ;;  %v1388_v24 = vld [vmem:[#allocation5 + $0x234] ss:$8 sps:$4 sm:$0xff]  }
  0x53   :  { %v1386_v27 = vld [vmem:[#allocation5 + $0x230] ss:$8 sps:$4 sm:$0xff]   ;;  %v1439_v28 = vld [vmem:[#allocation5 + $0xe0] ss:$8 sps:$4 sm:$0xff]   ;;  %v1394_v29 = vld [vmem:[#allocation5 + $0x244] ss:$8 sps:$4 sm:$0xff]  }
  0x54   :  { %802 = vmatpush1.bf16.msra.mxu0 %v1327_v22  ;;  %759 = vmatpush1.bf16.msra.mxu1 %v1385_v46  ;;  %v212_v22 = vrot.slane %v1459_v17, %v1653_v25  ;;  %v1445_v32 = vld [vmem:[#allocation5 + $0xf0] ss:$8 sps:$4 sm:$0xff]   ;;  %v1392_v33 = vld [vmem:[#allocation5 + $0x240] ss:$8 sps:$4 sm:$0xff]   ;;  %v1454_v34 = vld [vmem:[#allocation5 + $0x304] ss:$8 sps:$4 sm:$0xff]  }
  0x55   :  { %803 = vmatprep.subr.bf16.mxu0 %v1328_v23  ;;  %760 = vmatprep.subr.bf16.mxu1 %v1389_v47  ;;  %v1437_v23 = vld [vmem:[#allocation5 + $0xe4] ss:$8 sps:$4 sm:$0xff]   ;;  %v1398_v38 = vld [vmem:[#allocation5 + $0x250] ss:$8 sps:$4 sm:$0xff]   ;;  %v1580_v42 = vmov 0  }
  0x56   :  { %v215_v36 = vcombine.low %v198_v21, %v212_v22  ;;  %v1406_v40 = vld [vmem:[#allocation5 + $0x264] ss:$8 sps:$4 sm:$0xff]   ;;  %v1404_v43 = vld [vmem:[#allocation5 + $0x260] ss:$8 sps:$4 sm:$0xff]   ;;  %v1461_v46 = vld [vmem:[#allocation7] sm:$0xff]  }
  0x57   :  { %v1410_v47 = vld [vmem:[#allocation5 + $0x270] ss:$8 sps:$4 sm:$0xff]   ;;  %v1448_v62 = vld [vmem:[#allocation5 + $0x2d4] ss:$8 sps:$4 sm:$0xff]  }
  0x58   :  { %804 = vmatpush1.bf16.msra.mxu0 %v1330_v26  ;;  %761 = vmatpush1.bf16.msra.mxu1 %v1391_v50  ;;  %v216_v26 = vcombine.high %v198_v21, %v212_v22  ;;  %v230_v41 = vrot.slane %v215_v36, %v1653_v25  ;;  %v1463_v50 = vld [vmem:[#allocation7 + $0x8] sm:$0xff]  }
  0x59   :  { %805 = vmatprep.subr.bf16.mxu0 %v1331_v30  ;;  %762 = vmatprep.subr.bf16.mxu1 %v1395_v51  ;;  %v1443_v30 = vld [vmem:[#allocation5 + $0xf4] ss:$8 sps:$4 sm:$0xff]   ;;  %v1416_v51 = vld [vmem:[#allocation5 + $0x280] ss:$8 sps:$4 sm:$0xff]  }
  0x5a   :  { %v244_v31 = vrot.slane %v216_v26, %v1653_v25  ;;  %v173_v26 = vsub.s32 1, %v1650_v18 }
  0x5c   :  { %806 = vmatpush1.bf16.msra.mxu0 %v1333_v35  ;;  %763 = vmatpush1.bf16.msra.mxu1 %v1397_v54  ;;  %v1400_v35 = vld [vmem:[#allocation5 + $0x254] ss:$8 sps:$4 sm:$0xff]   ;;  %v1465_v54 = vld [vmem:[#allocation7 + $0x10] sm:$0xff]  }
  0x5d   :  { %807 = vmatprep.subr.bf16.mxu0 %v1334_v37  ;;  %764 = vmatprep.subr.bf16.mxu1 %v1401_v55  ;;  %v1452_v37 = vld [vmem:[#allocation5 + $0x300] ss:$8 sps:$4 sm:$0xff]   ;;  %v1422_v55 = vld [vmem:[#allocation5 + $0x290] ss:$8 sps:$4 sm:$0xff]  }
  0x60   :  { %808 = vmatpush1.bf16.msra.mxu0 %v1336_v39  ;;  %765 = vmatpush1.bf16.msra.mxu1 %v1403_v58  ;;  %v1460_v39 = vld [vmem:[#allocation7 + $0x40] sm:$0xff]  }
  0x61   :  { %809 = vmatprep.subr.bf16.mxu0 %v1337_v44  ;;  %766 = vmatprep.subr.bf16.mxu1 %v1407_v59  ;;  %v1412_v44 = vld [vmem:[#allocation5 + $0x274] ss:$8 sps:$4 sm:$0xff]   ;;  %v1434_v59 = vld [vmem:[#allocation5 + $0x2b0] ss:$8 sps:$4 sm:$0xff]  }
  0x62   :  { %v1436_v58 = vld [vmem:[#allocation5 + $0x2b4] ss:$8 sps:$4 sm:$0xff]  }
  0x64   :  { %810 = vmatpush1.bf16.msra.mxu0 %v1339_v45  ;;  %767 = vmatpush1.bf16.msra.mxu1 %v1409_v63  ;;  %v246_v45 = vcombine.high %v230_v41, %v230_v41  ;;  %v1446_v63 = vld [vmem:[#allocation5 + $0x2d0] ss:$8 sps:$4 sm:$0xff]  }
  0x65   :  { %811 = vmatprep.subr.bf16.mxu0 %v1340_v48  ;;  %768 = vmatprep.subr.bf16.mxu1 %v1413_v0  ;;  %v1462_v48 = vld [vmem:[#allocation7 + $0x48] sm:$0xff]   ;;  %v1451_v0 = vld [vmem:[#allocation5 + $0x2e4] ss:$8 sps:$4 sm:$0xff]  }
  0x68   :  { %812 = vmatpush1.bf16.msra.mxu0 %v1342_v49  ;;  %769 = vmatpush1.bf16.msra.mxu1 %v1415_v4  ;;  %v1418_v49 = vld [vmem:[#allocation5 + $0x284] ss:$8 sps:$4 sm:$0xff]  }
  0x69   :  { %813 = vmatprep.subr.bf16.mxu0 %v1343_v52  ;;  %770 = vmatprep.subr.bf16.mxu1 %v1419_v5  ;;  %v1464_v52 = vld [vmem:[#allocation7 + $0x50] sm:$0xff]   ;;  %v1466_v4 = vld [vmem:[#allocation7 + $0x58] sm:$0xff]  }
  0x6a   :  { %v1467_v5 = vld [vmem:[#allocation7 + $0x18] sm:$0xff]  }
  0x6c   :  { %814 = vmatpush1.bf16.msra.mxu0 %v1345_v53  ;;  %771 = vmatpush1.bf16.msra.mxu1 %v1421_v9  ;;  %v1424_v53 = vld [vmem:[#allocation5 + $0x294] ss:$8 sps:$4 sm:$0xff]  }
  0x6d   :  { %815 = vmatprep.subr.bf16.mxu0 %v1346_v56  ;;  %772 = vmatprep.subr.bf16.mxu1 %v1425_v10  ;;  %v1430_v56 = vld [vmem:[#allocation5 + $0x2a4] ss:$8 sps:$4 sm:$0xff]   ;;  %v1471_v9 = vld [vmem:[#allocation7 + $0x28] sm:$0xff]  }
  0x6e   :  { %v1472_v10 = vld [vmem:[#allocation7 + $0x70] sm:$0xff]  }
  0x70   :  { %816 = vmatpush1.bf16.msra.mxu0 %v1348_v57  ;;  %773 = vmatpush1.bf16.msra.mxu1 %v1427_v14  ;;  %v1428_v57 = vld [vmem:[#allocation5 + $0x2a0] ss:$8 sps:$4 sm:$0xff]  }
  0x71   :  { %817 = vmatprep.subr.bf16.mxu0 %v1352_v60  ;;  %774 = vmatprep.subr.bf16.mxu1 %v1431_v15  ;;  %v1442_v60 = vld [vmem:[#allocation5 + $0x2c4] ss:$8 sps:$4 sm:$0xff]  }
  0x74   :  { %818 = vmatpush1.bf16.msra.mxu0 %v1354_v61  ;;  %775 = vmatpush1.bf16.msra.mxu1 %v1433_v20  ;;  %v1440_v61 = vld [vmem:[#allocation5 + $0x2c0] ss:$8 sps:$4 sm:$0xff]  }
  0x75   :  { %819 = vmatprep.subr.bf16.mxu0 %v1358_v1  ;;  %776 = vmatprep.subr.bf16.mxu1 %v1437_v23  ;;  %v1449_v1 = vld [vmem:[#allocation5 + $0x2e0] ss:$8 sps:$4 sm:$0xff]   ;;  %v169_v23 = vsub.s32 0, %v1650_v18  ;;  %v1242_v18 = vld [vmem:[%s1703_s4] ss:$0 sm:$0xff] }
  0x78   :  { %820 = vmatpush1.bf16.msra.mxu0 %v1360_v2  ;;  %777 = vmatpush1.bf16.msra.mxu1 %v1439_v28  ;;  %v1457_v2 = vld [vmem:[#allocation5 + $0x2f4] ss:$8 sps:$4 sm:$0xff]  }
  0x79   :  { %830 = vmatprep.subr.bf16.mxu0 %v1370_v6  ;;  %778 = vmatprep.subr.bf16.mxu1 %v1443_v30  ;;  %v1468_v6 = vld [vmem:[#allocation7 + $0x60] sm:$0xff]  }
  0x7b   :  { %822 = vmatmul.mubr.bf16.vlgmr.msra.gmra.mrb[0].mxu0 %v245_v8  ;;  %v1470_v8 = vld [vmem:[#allocation7 + $0x68] sm:$0xff]  }
  0x7c   :  { %831 = vmatpush1.bf16.msra.mxu0 %v1368_v7  ;;  %862 = vmatprep.mubr.bf16.mxu0 %v244_v31  ;;  %v1469_v7 = vld [vmem:[#allocation7 + $0x20] sm:$0xff]  }
  0x7d   :  { %832 = vmatprep.subr.bf16.mxu0 %v1376_v11  ;;  %779 = vmatpush1.bf16.msra.mxu1 %v1445_v32  ;;  %v1473_v11 = vld [vmem:[#allocation7 + $0x30] sm:$0xff]  }
  0x7e   :  { %871 = vmatprep.subr.bf16.mxu1 %v1454_v34 }
  0x80   :  { %833 = vmatpush1.bf16.msra.mxu0 %v1374_v12  ;;  %781 = vmatmul.mubr.bf16.vlgmr.msra.gmra.mrb[0].mxu1 %v1667_v3  ;;  %v1455_v3 = vld [vmem:[#allocation5 + $0x2f0] ss:$8 sps:$4 sm:$0xff]   ;;  %v1474_v12 = vld [vmem:[#allocation7 + $0x78] sm:$0xff]  }
  0x81   :  { %834 = vmatprep.subr.bf16.mxu0 %v1382_v13  ;;  %872 = vmatpush1.bf16.msra.mxu1 %v1452_v37  ;;  %v1475_v13 = vld [vmem:[#allocation7 + $0x38] sm:$0xff]  }
  0x82   :  { %903 = vmatprep.mubr.bf16.mxu1 %v1580_v42  ;;  %1261 = vmatprep.subr.bf16.mxu1 %v1460_v39 }
  0x84   :  { %835 = vmatpush1.bf16.msra.mxu0 %v1380_v19 }
  0x85   :  { %836 = vmatprep.subr.bf16.mxu0 %v1388_v24  ;;  %v165_v24 = vld [vmem:[%s1701_s2] sm:$0x3] }
  0x86   :  { %v174_v28 = vrot.slane %v165_v24, %v173_v26 }
  0x88   :  { %837 = vmatpush1.bf16.msra.mxu0 %v1386_v27  ;;  %1241 = vmatmul.mubr.msk.bf16.vlgmr.msra.gmra.mrb[4].mxu1 %vm744_vm0, %v246_v45  ;;  %v170_v27 = vrot.slane %v165_v24, %v169_v23 }
  0x89   :  { %838 = vmatprep.subr.bf16.mxu0 %v1394_v29  ;;  %1262 = vmatpush3.bf16.msra.mxu1 %v1461_v46 }
  0x8a   :  { %1263 = vmatprep.subr.bf16.mxu1 %v1462_v48 }
  0x8c   :  { %839 = vmatpush1.bf16.msra.mxu0 %v1392_v33 }
  0x8d   :  { %840 = vmatprep.subr.bf16.mxu0 %v1400_v35  ;;  %1264 = vmatpush3.bf16.msra.mxu1 %v1463_v50 }
  0x8e   :  { %1265 = vmatprep.subr.bf16.mxu1 %v1464_v52 }
  0x90   :  { %841 = vmatpush1.bf16.msra.mxu0 %v1398_v38 }
  0x91   :  { %842 = vmatprep.subr.bf16.mxu0 %v1406_v40  ;;  %1266 = vmatpush3.bf16.msra.mxu1 %v1465_v54 }
  0x92   :  { %1267 = vmatprep.subr.bf16.mxu1 %v1466_v4 }
  0x94   :  { %843 = vmatpush1.bf16.msra.mxu0 %v1404_v43 }
  0x95   :  { %844 = vmatprep.subr.bf16.mxu0 %v1412_v44  ;;  %1268 = vmatpush3.bf16.msra.mxu1 %v1467_v5 }
  0x96   :  { %1269 = vmatprep.subr.bf16.mxu1 %v1468_v6 }
  0x98   :  { %845 = vmatpush1.bf16.msra.mxu0 %v1410_v47 }
  0x99   :  { %846 = vmatprep.subr.bf16.mxu0 %v1418_v49  ;;  %1270 = vmatpush3.bf16.msra.mxu1 %v1469_v7 }
  0x9a   :  { %1271 = vmatprep.subr.bf16.mxu1 %v1470_v8 }
  0x9c   :  { %847 = vmatpush1.bf16.msra.mxu0 %v1416_v51 }
  0x9d   :  { %848 = vmatprep.subr.bf16.mxu0 %v1424_v53  ;;  %1272 = vmatpush3.bf16.msra.mxu1 %v1471_v9 }
  0x9e   :  { %1273 = vmatprep.subr.bf16.mxu1 %v1472_v10 }
  0xa0   :  { %849 = vmatpush1.bf16.msra.mxu0 %v1422_v55 }
  0xa1   :  { %850 = vmatprep.subr.bf16.mxu0 %v1430_v56  ;;  %1274 = vmatpush3.bf16.msra.mxu1 %v1473_v11 }
  0xa2   :  { %1275 = vmatprep.subr.bf16.mxu1 %v1474_v12 }
  0xa4   :  { %851 = vmatpush1.bf16.msra.mxu0 %v1428_v57 }
  0xa5   :  { %852 = vmatprep.subr.bf16.mxu0 %v1436_v58  ;;  %1276 = vmatpush3.bf16.msra.mxu1 %v1475_v13 }
  0xa8   :  { %853 = vmatpush1.bf16.msra.mxu0 %v1434_v59 }
  0xa9   :  { %854 = vmatprep.subr.bf16.mxu0 %v1442_v60 }
  0xac   :  { %855 = vmatpush1.bf16.msra.mxu0 %v1440_v61 }
  0xad   :  { %856 = vmatprep.subr.bf16.mxu0 %v1448_v62 }
  0xb0   :  { %857 = vmatpush1.bf16.msra.mxu0 %v1446_v63 }
  0xb1   :  { %858 = vmatprep.subr.bf16.mxu0 %v1451_v0 }
  0xb4   :  { %859 = vmatpush1.bf16.msra.mxu0 %v1449_v1 }
  0xb5   :  { %860 = vmatprep.subr.bf16.mxu0 %v1457_v2 }
  0xb8   :  { %861 = vmatpush1.bf16.msra.mxu0 %v1455_v3 }
  0xbb   :  { %863 = vmatmul.mubr.bf16.vlgmr.msra.gmra.mrb[0].mxu0 %v230_v41 }
 0x153   :  { %v782_v14 = vpop.f32.mrb[0].mxu1 }
 0x154   :  { %v784_v15 = vpop.f32.mrb[1].mxu1  ;;  %v783_v29 = vadd.f32 %v782_v14, %v170_v27 }
 0x155   :  { %v786_v16 = vpop.f32.mrb[2].mxu1  ;;  %v785_v30 = vadd.f32 %v784_v15, %v174_v28 }
 0x156   :  { %v787_v17 = vpop.f32.mrb[3].mxu1 }
 0x15b   :  { %v905_v19 = vpop.f32.mrb[4].mxu1 }
 0x15c   :  { %v907_v20 = vpop.f32.mrb[5].mxu1 }
 0x15d   :  { %v909_v21 = vpop.f32.mrb[6].mxu1 }
 0x15e   :  { %v910_v22 = vpop.f32.mrb[7].mxu1 }
 0x18e   :  { %v864_v31 = vpop.f32.mrb[0].mxu0 }
 0x18f   :  { %v1284_v32 = vadd.f32 %v864_v31, %v783_v29  ;;  %v866_v33 = vpop.f32.mrb[1].mxu0 }
 0x190   :  { %v1287_v34 = vadd.f32 %v866_v33, %v785_v30  ;;  %v868_v35 = vpop.f32.mrb[2].mxu0 }
 0x191   :  { %v1285_v36 = vadd.f32 %v1284_v32, %v905_v19  ;;  %v869_v37 = vpop.f32.mrb[3].mxu0 }
 0x192   :  { %v1288_v38 = vadd.f32 %v1287_v34, %v907_v20 }
 0x193   :  { %v912_v39 = vmax.f32 %v1285_v36, 0.0 }
 0x194   :  { %v913_v40 = vmax.f32 %v1288_v38, 0.0 }
 0x195   :  { %v914_v42 = vpack.c.bf16 %v912_v39, %v912_v39 }
 0x196   :  { %v915_v41 = vpack.c.bf16 %v913_v40, %v913_v40 }
 0x198   :  { %1083 = vmatprep.mubr.bf16.mxu1 %v915_v41 }
 0x199   :  { %1084 = vmatmul.mubr.bf16.vlgmr.msra.gmra.mrb[8].mxu1 %v914_v42 }
 0x26c   :  { %v1277_v43 = vpop.f32.mrb[8].mxu1 }
 0x26d   :  { %v1278_v44 = vpop.f32.mrb[9].mxu1 }
 0x26e   :  { %v1279_v45 = vadd.f32 %v1278_v44, %v1277_v43  ;;  %v1280_v46 = vpop.f32.mrb[10].mxu1 }
 0x26f   :  { %v1281_v47 = vpop.f32.mrb[11].mxu1 }
 0x270   :  { %v1086_v48 = vadd.f32 %v1279_v45, %v1242_v18 }
 0x272   :  { %v1091_v49 = vpack.c.bf16 %v1086_v48, %v1086_v48 }
 0x274   :  { %v1099_v50 = vrot.slane %v1091_v49, %v1653_v25 }
 0x276   :  { %v1100_v51 = vcombine.high %v1099_v50, %v1099_v50  ;;  %v1107_v52 = vrot.slane %v1099_v50, %v1653_v25  ;;  %1259 = vst.sshfl [vmem:[#allocation8] sm:$0x1 pattern:$0x73625140] %v1099_v50 }
 0x278   :  { %v1114_v53 = vrot.slane %v1100_v51, %v1653_v25  ;;  %v1115_v54 = vcombine.high %v1107_v52, %v1107_v52  ;;  %1260 = vst.sshfl [vmem:[#allocation8 + $0x1] sm:$0x1 pattern:$0x73625140] %v1100_v51 }
 0x27a   :  { %v1116_v55 = vcombine.high %v1114_v53, %v1114_v53  ;;  %1123 = vst [vmem:[#allocation8 + $0x2] sm:$0x1] %v1115_v54 }
 0x27c   :  { %1124 = vst [vmem:[#allocation8 + $0x3] sm:$0x1] %v1116_v55 }
 0x27d   :  { %1129 = vsyncadd [#allocation4], 48  ;;  %s1581_s4 = smov [#allocation8]  }
 0x27e   :  { %s1130_s11 = sshll.u32 %s1581_s4, 4  ;;  %s1131_s11 = int_to_ptr.vmem [resolvable:$true] %s1130_s11 }
 0x27f   :  { %s1542_s12 = scalar_lea.vmem %s1131_s11, 16  ;;  %s1546_s13 = scalar_lea.vmem %s1131_s11, 64 }
 0x280   :  { %p1543_p10 = scmp.ne.s32.totalorder %s1131_s11, %s1542_s12  ;;  %p1547_p11 = scmp.lt.s32.totalorder %s1131_s11, %s1131_s11 }
 0x281   :  { %p1548_p12 = scmp.lt.s32.totalorder %s1546_s13, %s1542_s12 }
 0x283   :  { %p1549_p13 = por %p1548_p12, %p1547_p11 }
 0x285   :  { %p1550_p0 = pnand %p1549_p13, %p1543_p10 }
 0x287   :  { %1553 = shalt.err (!%p1550_p0)
}
 0x288   :  { %s1554_s16 = scalar_lea.hbm %s1704_s5, 16 }
 0x289   :  { %p1555_p1 = scmp.ne.s32.totalorder %s1704_s5, %s1554_s16  ;;  %p1558_p2 = scmp.lt.u32.totalorder %s1554_s16, %s1704_s5 }
 0x28b   :  { %p1560_p3 = pnand %p1558_p2, %p1555_p1 }
 0x28d   :  { %1563 = shalt.err (!%p1560_p3)
}
 0x28e   :  { %s1582_s20 = smov 16   ;;  %s1583_s21 = smov 1  }
 0x28f   :  { %1136 = dma.vmem_to_hbm [thread:$0]  %s1131_s11, 16, %s1704_s5, [#allocation4], %s1582_s20, %s1582_s20, %s1583_s21  }
 0x290   :  { %1568 = dma.done.wait [#allocation4], 64  }
 0x291   :  { %1569 = vsyncadd [#allocation4], 4294967232 }
 0x292   :  { %1140 = vsyncpa [#allocation3], 1 }
 0x293   :  { %1141 = vsyncpa [#allocation6], 1 }
 0x294   :  { %1142 = vsyncpa [#allocation4], 1 }

// kernel: tpu_custom_call.1
= control target key start
LH: loop header
LB: loop body
LE: loop exit
PB: predicated region body
PF: predicated region fallthrough
CT: control target
= control target key end

     0   :  { %10 = vsyncpa [#allocation3], 0  ;;  %s1699_s0 = inlined_call_operand.hbm [shape: bf16[2,784], index: 0, kind: input, shape index: {}]   ;;  %s1700_s1 = inlined_call_operand.hbm [shape: bf16[784,256], index: 1, kind: input, shape index: {}]   ;;  %s1701_s2 = inlined_call_operand.vmem [shape: f32[1,256], index: 2, kind: input, shape index: {}]   ;;  %s1702_s3 = inlined_call_operand.hbm [shape: bf16[256,128], index: 3, kind: input, shape index: {}]   ;;  %s1703_s4 = inlined_call_operand.vmem [shape: f32[1,128], index: 4, kind: input, shape index: {}]   ;;  %s1704_s5 = inlined_call_operand.hbm [shape: bf16[2,128], index: 5, kind: output, shape index: {}]  }
   0x1   :  { %11 = vsyncpa [#allocation6], 0 }
   0x2   :  { %12 = vsyncpa [#allocation4], 0 }
   0x3   :  { %17 = vsyncadd [#allocation3], 336  ;;  %s1570_s18 = smov [#allocation5]   ;;  %s1476_s22 = scalar_lea.hbm %s1700_s1, 12544 }
   0x4   :  { %s30_s19 = sshll.u32 %s1570_s18, 4  ;;  %p1477_p0 = scmp.ne.s32.totalorder %s1700_s1, %s1476_s22  ;;  %s31_s19 = int_to_ptr.vmem [resolvable:$true] %s30_s19 }
   0x5   :  { %p1480_p1 = scmp.lt.u32.totalorder %s1476_s22, %s1700_s1 }
   0x7   :  { %p1482_p2 = pnand %p1480_p1, %p1477_p0 }
   0x9   :  { %1485 = shalt.err (!%p1482_p2)
}
   0xa   :  { %s1486_s27 = scalar_lea.vmem %s31_s19, 12544  ;;  %p1491_p4 = scmp.lt.s32.totalorder %s31_s19, %s31_s19 }
   0xb   :  { %p1487_p3 = scmp.ne.s32.totalorder %s31_s19, %s1486_s27  ;;  %p1492_p5 = scmp.lt.s32.totalorder %s1486_s27, %s1486_s27 }
   0xd   :  { %p1493_p6 = por %p1492_p5, %p1491_p4 }
   0xf   :  { %p1494_p7 = pnand %p1493_p6, %p1487_p3 }
  0x11   :  { %1497 = shalt.err (!%p1494_p7)
}
  0x12   :  { %s1571_s28 = smov 128   ;;  %s1572_s29 = smov 8  }
  0x13   :  { %36 = dma.hbm_to_vmem [thread:$0]  %s1700_s1, 12544, %s31_s19, [#allocation6], %s1571_s28, %s1571_s28, %s1572_s29  }
  0x14   :  { %s1573_s7 = smov [#allocation2]   ;;  %s1498_s11 = scalar_lea.hbm %s1699_s0, 112 }
  0x15   :  { %s18_s8 = sshll.u32 %s1573_s7, 4  ;;  %p1499_p8 = scmp.ne.s32.totalorder %s1699_s0, %s1498_s11  ;;  %s19_s8 = int_to_ptr.vmem [resolvable:$true] %s18_s8 }
  0x16   :  { %p1502_p9 = scmp.lt.u32.totalorder %s1498_s11, %s1699_s0 }
  0x18   :  { %p1504_p10 = pnand %p1502_p9, %p1499_p8 }
  0x1a   :  { %1507 = shalt.err (!%p1504_p10)
}
  0x1b   :  { %s1508_s16 = scalar_lea.vmem %s19_s8, 112  ;;  %s1512_s1 = scalar_lea.vmem %s19_s8, 448 }
  0x1c   :  { %p1509_p11 = scmp.ne.s32.totalorder %s19_s8, %s1508_s16  ;;  %p1513_p12 = scmp.lt.s32.totalorder %s19_s8, %s19_s8 }
  0x1d   :  { %p1514_p13 = scmp.lt.s32.totalorder %s1512_s1, %s1508_s16 }
  0x1f   :  { %p1515_p0 = por %p1514_p13, %p1513_p12 }
  0x21   :  { %p1516_p1 = pnand %p1515_p0, %p1509_p11 }
  0x23   :  { %1519 = shalt.err (!%p1516_p1)
}
  0x24   :  { %s1574_s17 = smov 112   ;;  %s1575_s18 = smov 7  }
  0x25   :  { %24 = dma.hbm_to_vmem [thread:$0]  %s1699_s0, 112, %s19_s8, [#allocation3], %s1574_s17, %s1574_s17, %s1575_s18  }
  0x26   :  { %s1576_s21 = smov [#allocation7]   ;;  %s1520_s25 = scalar_lea.hbm %s1702_s3, 2048 }
  0x27   :  { %s44_s22 = sshll.u32 %s1576_s21, 4  ;;  %p1521_p2 = scmp.ne.s32.totalorder %s1702_s3, %s1520_s25  ;;  %s45_s22 = int_to_ptr.vmem [resolvable:$true] %s44_s22 }
  0x28   :  { %p1524_p3 = scmp.lt.u32.totalorder %s1520_s25, %s1702_s3 }
  0x2a   :  { %p1526_p4 = pnand %p1524_p3, %p1521_p2 }
  0x2c   :  { %1529 = shalt.err (!%p1526_p4)
}
  0x2d   :  { %s1530_s30 = scalar_lea.vmem %s45_s22, 2048  ;;  %p1535_p6 = scmp.lt.s32.totalorder %s45_s22, %s45_s22 }
  0x2e   :  { %p1531_p5 = scmp.ne.s32.totalorder %s45_s22, %s1530_s30  ;;  %p1536_p7 = scmp.lt.s32.totalorder %s1530_s30, %s1530_s30 }
  0x30   :  { %p1537_p8 = por %p1536_p7, %p1535_p6 }
  0x32   :  { %p1538_p9 = pnand %p1537_p8, %p1531_p5 }
  0x34   :  { %1541 = shalt.err (!%p1538_p9)
}
  0x35   :  { %s1577_s0 = smov 64   ;;  %s1578_s6 = smov 4  }
  0x36   :  { %50 = dma.hbm_to_vmem [thread:$0]  %s1702_s3, 2048, %s45_s22, [#allocation6], %s1577_s0, %s1577_s0, %s1578_s6  }
  0x37   :  { %1564 = dma.done.wait [#allocation3], 448  }
  0x38   :  { %1565 = vsyncadd [#allocation3], 4294966848 }
  0x39   :  { %1566 = dma.done.wait [#allocation6], 14592  }
  0x3a   :  { %1567 = vsyncadd [#allocation6], 4294952704  ;;  %v1307_v0 = vld [vmem:[#allocation5 + $0x104] ss:$8 sps:$4 sm:$0xff]   ;;  %v1309_v1 = vld [vmem:[#allocation5 + $0x100] ss:$8 sps:$4 sm:$0xff]   ;;  %v167_v11 = vlaneseq }
  0x3b   :  { %789 = vmatprep.subr.bf16.mxu0 %v1307_v0  ;;  %v1310_v2 = vld [vmem:[#allocation5 + $0x114] ss:$8 sps:$4 sm:$0xff]   ;;  %v1312_v3 = vld [vmem:[#allocation5 + $0x110] ss:$8 sps:$4 sm:$0xff]   ;;  %v1313_v4 = vld [vmem:[#allocation5 + $0x124] ss:$8 sps:$4 sm:$0xff]  }
  0x3c   :  { %790 = vmatpush1.bf16.msra.mxu0 %v1309_v1  ;;  %v1315_v5 = vld [vmem:[#allocation5 + $0x120] ss:$8 sps:$4 sm:$0xff]   ;;  %v1316_v6 = vld [vmem:[#allocation5 + $0x134] ss:$8 sps:$4 sm:$0xff]   ;;  %v1318_v7 = vld [vmem:[#allocation5 + $0x130] ss:$8 sps:$4 sm:$0xff]  }
  0x3d   :  { %791 = vmatprep.subr.bf16.mxu0 %v1310_v2  ;;  %v1319_v8 = vld [vmem:[#allocation5 + $0x144] ss:$8 sps:$4 sm:$0xff]   ;;  %v1321_v9 = vld [vmem:[#allocation5 + $0x140] ss:$8 sps:$4 sm:$0xff]   ;;  %v1322_v10 = vld [vmem:[#allocation5 + $0x154] ss:$8 sps:$4 sm:$0xff]  }
  0x3e   :  { %v1579_v12 = vmov 1966171168   ;;  %v1324_v14 = vld [vmem:[#allocation5 + $0x150] ss:$8 sps:$4 sm:$0xff]   ;;  %v1349_v15 = vld [vmem:[#allocation5 + $0x4] ss:$8 sps:$4 sm:$0xff]  }
  0x3f   :  { %v186_v13 = vunpack.c.l.s4 %v1579_v12  ;;  %v1351_v16 = vld [vmem:[#allocation5] ss:$8 sps:$4 sm:$0xff]   ;;  %v1325_v17 = vld [vmem:[#allocation5 + $0x164] ss:$8 sps:$4 sm:$0xff]   ;;  %v1650_v18 = vshrl.u32 %v167_v11, 7  ;;  %748 = vmatprep.subr.bf16.mxu1 %v1349_v15  ;;  %vm744_vm0 = vcmask 130048  }
  0x40   :  { %792 = vmatpush1.bf16.msra.mxu0 %v1312_v3  ;;  %749 = vmatpush1.bf16.msra.mxu1 %v1351_v16  ;;  %v1355_v20 = vld [vmem:[#allocation5 + $0x14] ss:$8 sps:$4 sm:$0xff]   ;;  %v1357_v21 = vld [vmem:[#allocation5 + $0x10] ss:$8 sps:$4 sm:$0xff]   ;;  %v1327_v22 = vld [vmem:[#allocation5 + $0x160] ss:$8 sps:$4 sm:$0xff]  }
  0x41   :  { %793 = vmatprep.subr.bf16.mxu0 %v1313_v4  ;;  %v187_v19 = vunpack.c.0.s8 %v186_v13  ;;  %v1328_v23 = vld [vmem:[#allocation5 + $0x174] ss:$8 sps:$4 sm:$0xff]   ;;  %750 = vmatprep.subr.bf16.mxu1 %v1355_v20  ;;  %v1361_v24 = vld [vmem:[#allocation5 + $0x24] ss:$8 sps:$4 sm:$0xff]   ;;  %v1330_v26 = vld [vmem:[#allocation5 + $0x170] ss:$8 sps:$4 sm:$0xff]  }
  0x42   :  { %v1363_v27 = vld [vmem:[#allocation5 + $0x20] ss:$8 sps:$4 sm:$0xff]   ;;  %v1366_v29 = vld [vmem:[#allocation2 + $0xe] ss:$7 sps:$4 sm:$0xff]   ;;  %v1331_v30 = vld [vmem:[#allocation5 + $0x184] ss:$8 sps:$4 sm:$0xff]  }
  0x43   :  { %v1653_v25 = vsub.s32 %v187_v19, %v1650_v18  ;;  %v1364_v28 = vld [vmem:[#allocation2] ss:$7 sps:$4 sm:$0xff]   ;;  %v1371_v33 = vld [vmem:[#allocation5 + $0x34] ss:$8 sps:$4 sm:$0xff]   ;;  %v1373_v34 = vld [vmem:[#allocation5 + $0x30] ss:$8 sps:$4 sm:$0xff]  }
  0x44   :  { %794 = vmatpush1.bf16.msra.mxu0 %v1315_v5  ;;  %751 = vmatpush1.bf16.msra.mxu1 %v1357_v21  ;;  %v1333_v35 = vld [vmem:[#allocation5 + $0x180] ss:$8 sps:$4 sm:$0xff]   ;;  %v1334_v37 = vld [vmem:[#allocation5 + $0x194] ss:$8 sps:$4 sm:$0xff]   ;;  %v1377_v38 = vld [vmem:[#allocation5 + $0x44] ss:$8 sps:$4 sm:$0xff]  }
  0x45   :  { %795 = vmatprep.subr.bf16.mxu0 %v1316_v6  ;;  %752 = vmatprep.subr.bf16.mxu1 %v1361_v24  ;;  %v1656_v31 = vrot.slane %v1364_v28, %v1653_v25  ;;  %v1659_v32 = vrot.slane %v1366_v29, %v1653_v25  ;;  %v1336_v39 = vld [vmem:[#allocation5 + $0x190] ss:$8 sps:$4 sm:$0xff]   ;;  %v1379_v41 = vld [vmem:[#allocation5 + $0x40] ss:$8 sps:$4 sm:$0xff]   ;;  %v1383_v43 = vld [vmem:[#allocation5 + $0x54] ss:$8 sps:$4 sm:$0xff]  }
  0x46   :  { %v1337_v44 = vld [vmem:[#allocation5 + $0x1a4] ss:$8 sps:$4 sm:$0xff]   ;;  %v1339_v45 = vld [vmem:[#allocation5 + $0x1a0] ss:$8 sps:$4 sm:$0xff]   ;;  %v1385_v46 = vld [vmem:[#allocation5 + $0x50] ss:$8 sps:$4 sm:$0xff]  }
  0x47   :  { %v214_v36 = vcombine.high %v1656_v31, %v1659_v32  ;;  %v1389_v47 = vld [vmem:[#allocation5 + $0x64] ss:$8 sps:$4 sm:$0xff]   ;;  %v1340_v48 = vld [vmem:[#allocation5 + $0x1b4] ss:$8 sps:$4 sm:$0xff]   ;;  %v1342_v49 = vld [vmem:[#allocation5 + $0x1b0] ss:$8 sps:$4 sm:$0xff]   ;;  %v213_v62 = vcombine.low %v1656_v31, %v1659_v32 }
  0x48   :  { %796 = vmatpush1.bf16.msra.mxu0 %v1318_v7  ;;  %753 = vmatpush1.bf16.msra.mxu1 %v1363_v27  ;;  %v1391_v50 = vld [vmem:[#allocation5 + $0x60] ss:$8 sps:$4 sm:$0xff]   ;;  %v1395_v51 = vld [vmem:[#allocation5 + $0x74] ss:$8 sps:$4 sm:$0xff]   ;;  %v1343_v52 = vld [vmem:[#allocation5 + $0x1c4] ss:$8 sps:$4 sm:$0xff]  }
  0x49   :  { %797 = vmatprep.subr.bf16.mxu0 %v1319_v8  ;;  %754 = vmatprep.subr.bf16.mxu1 %v1371_v33  ;;  %v237_v40 = vrot.slane %v214_v36, %v1653_v25  ;;  %v1345_v53 = vld [vmem:[#allocation5 + $0x1c0] ss:$8 sps:$4 sm:$0xff]   ;;  %v1397_v54 = vld [vmem:[#allocation5 + $0x70] ss:$8 sps:$4 sm:$0xff]   ;;  %v1401_v55 = vld [vmem:[#allocation5 + $0x84] ss:$8 sps:$4 sm:$0xff]   ;;  %v1667_v3 = vrot.slane %v213_v62, %v1653_v25 }
  0x4a   :  { %v1346_v56 = vld [vmem:[#allocation5 + $0x1d4] ss:$8 sps:$4 sm:$0xff]   ;;  %v1348_v57 = vld [vmem:[#allocation5 + $0x1d0] ss:$8 sps:$4 sm:$0xff]   ;;  %v1403_v58 = vld [vmem:[#allocation5 + $0x80] ss:$8 sps:$4 sm:$0xff]  }
  0x4b   :  { %v247_v42 = vcombine.high %v237_v40, %v237_v40  ;;  %780 = vmatprep.mubr.bf16.mxu1 %v237_v40  ;;  %v1407_v59 = vld [vmem:[#allocation5 + $0x94] ss:$8 sps:$4 sm:$0xff]   ;;  %v1352_v60 = vld [vmem:[#allocation5 + $0x1e4] ss:$8 sps:$4 sm:$0xff]   ;;  %v1354_v61 = vld [vmem:[#allocation5 + $0x1e0] ss:$8 sps:$4 sm:$0xff]   ;;  %v245_v8 = vcombine.high %v1667_v3, %v1667_v3 }
  0x4c   :  { %798 = vmatpush1.bf16.msra.mxu0 %v1321_v9  ;;  %755 = vmatpush1.bf16.msra.mxu1 %v1373_v34  ;;  %v1409_v63 = vld [vmem:[#allocation5 + $0x90] ss:$8 sps:$4 sm:$0xff]   ;;  %v1413_v0 = vld [vmem:[#allocation5 + $0xa4] ss:$8 sps:$4 sm:$0xff]   ;;  %v1358_v1 = vld [vmem:[#allocation5 + $0x1f4] ss:$8 sps:$4 sm:$0xff]  }
  0x4d   :  { %799 = vmatprep.subr.bf16.mxu0 %v1322_v10  ;;  %756 = vmatprep.subr.bf16.mxu1 %v1377_v38  ;;  %v1360_v2 = vld [vmem:[#allocation5 + $0x1f0] ss:$8 sps:$4 sm:$0xff]   ;;  %v1415_v4 = vld [vmem:[#allocation5 + $0xa0] ss:$8 sps:$4 sm:$0xff]   ;;  %v1419_v5 = vld [vmem:[#allocation5 + $0xb4] ss:$8 sps:$4 sm:$0xff]  }
  0x4e   :  { %821 = vmatprep.mubr.bf16.mxu0 %v247_v42  ;;  %v1370_v6 = vld [vmem:[#allocation5 + $0x204] ss:$8 sps:$4 sm:$0xff]   ;;  %v1368_v7 = vld [vmem:[#allocation5 + $0x200] ss:$8 sps:$4 sm:$0xff]   ;;  %v1421_v9 = vld [vmem:[#allocation5 + $0xb0] ss:$8 sps:$4 sm:$0xff]  }
  0x4f   :  { %v1425_v10 = vld [vmem:[#allocation5 + $0xc4] ss:$8 sps:$4 sm:$0xff]   ;;  %v1376_v11 = vld [vmem:[#allocation5 + $0x214] ss:$8 sps:$4 sm:$0xff]   ;;  %v1374_v12 = vld [vmem:[#allocation5 + $0x210] ss:$8 sps:$4 sm:$0xff]  }
  0x50   :  { %800 = vmatpush1.bf16.msra.mxu0 %v1324_v14  ;;  %757 = vmatpush1.bf16.msra.mxu1 %v1379_v41  ;;  %v1382_v13 = vld [vmem:[#allocation5 + $0x224] ss:$8 sps:$4 sm:$0xff]   ;;  %v1427_v14 = vld [vmem:[#allocation5 + $0xc0] ss:$8 sps:$4 sm:$0xff]   ;;  %v1431_v15 = vld [vmem:[#allocation5 + $0xd4] ss:$8 sps:$4 sm:$0xff]  }
  0x51   :  { %801 = vmatprep.subr.bf16.mxu0 %v1325_v17  ;;  %758 = vmatprep.subr.bf16.mxu1 %v1383_v43  ;;  %v1458_v16 = vld [vmem:[#allocation2 + $0x4] ss:$7 sps:$4 sm:$0x77]   ;;  %v1459_v17 = vld [vmem:[#allocation2 + $0x12] ss:$7 sps:$4 sm:$0x77]  }
  0x52   :  { %v1380_v19 = vld [vmem:[#allocation5 + $0x220] ss:$8 sps:$4 sm:$0xff]   ;;  %v1433_v20 = vld [vmem:[#allocation5 + $0xd0] ss:$8 sps:$4 sm:$0xff]   ;;  %v198_v21 = vrot.slane %v1458_v16, %v1653_v25  ;;  %v1388_v24 = vld [vmem:[#allocation5 + $0x234] ss:$8 sps:$4 sm:$0xff]  }
  0x53   :  { %v1386_v27 = vld [vmem:[#allocation5 + $0x230] ss:$8 sps:$4 sm:$0xff]   ;;  %v1439_v28 = vld [vmem:[#allocation5 + $0xe0] ss:$8 sps:$4 sm:$0xff]   ;;  %v1394_v29 = vld [vmem:[#allocation5 + $0x244] ss:$8 sps:$4 sm:$0xff]  }
  0x54   :  { %802 = vmatpush1.bf16.msra.mxu0 %v1327_v22  ;;  %759 = vmatpush1.bf16.msra.mxu1 %v1385_v46  ;;  %v212_v22 = vrot.slane %v1459_v17, %v1653_v25  ;;  %v1445_v32 = vld [vmem:[#allocation5 + $0xf0] ss:$8 sps:$4 sm:$0xff]   ;;  %v1392_v33 = vld [vmem:[#allocation5 + $0x240] ss:$8 sps:$4 sm:$0xff]   ;;  %v1454_v34 = vld [vmem:[#allocation5 + $0x304] ss:$8 sps:$4 sm:$0xff]  }
  0x55   :  { %803 = vmatprep.subr.bf16.mxu0 %v1328_v23  ;;  %760 = vmatprep.subr.bf16.mxu1 %v1389_v47  ;;  %v1437_v23 = vld [vmem:[#allocation5 + $0xe4] ss:$8 sps:$4 sm:$0xff]   ;;  %v1398_v38 = vld [vmem:[#allocation5 + $0x250] ss:$8 sps:$4 sm:$0xff]   ;;  %v1580_v42 = vmov 0  }
  0x56   :  { %v215_v36 = vcombine.low %v198_v21, %v212_v22  ;;  %v1406_v40 = vld [vmem:[#allocation5 + $0x264] ss:$8 sps:$4 sm:$0xff]   ;;  %v1404_v43 = vld [vmem:[#allocation5 + $0x260] ss:$8 sps:$4 sm:$0xff]   ;;  %v1461_v46 = vld [vmem:[#allocation7] sm:$0xff]  }
  0x57   :  { %v1410_v47 = vld [vmem:[#allocation5 + $0x270] ss:$8 sps:$4 sm:$0xff]   ;;  %v1448_v62 = vld [vmem:[#allocation5 + $0x2d4] ss:$8 sps:$4 sm:$0xff]  }
  0x58   :  { %804 = vmatpush1.bf16.msra.mxu0 %v1330_v26  ;;  %761 = vmatpush1.bf16.msra.mxu1 %v1391_v50  ;;  %v216_v26 = vcombine.high %v198_v21, %v212_v22  ;;  %v230_v41 = vrot.slane %v215_v36, %v1653_v25  ;;  %v1463_v50 = vld [vmem:[#allocation7 + $0x8] sm:$0xff]  }
  0x59   :  { %805 = vmatprep.subr.bf16.mxu0 %v1331_v30  ;;  %762 = vmatprep.subr.bf16.mxu1 %v1395_v51  ;;  %v1443_v30 = vld [vmem:[#allocation5 + $0xf4] ss:$8 sps:$4 sm:$0xff]   ;;  %v1416_v51 = vld [vmem:[#allocation5 + $0x280] ss:$8 sps:$4 sm:$0xff]  }
  0x5a   :  { %v244_v31 = vrot.slane %v216_v26, %v1653_v25  ;;  %v173_v26 = vsub.s32 1, %v1650_v18 }
  0x5c   :  { %806 = vmatpush1.bf16.msra.mxu0 %v1333_v35  ;;  %763 = vmatpush1.bf16.msra.mxu1 %v1397_v54  ;;  %v1400_v35 = vld [vmem:[#allocation5 + $0x254] ss:$8 sps:$4 sm:$0xff]   ;;  %v1465_v54 = vld [vmem:[#allocation7 + $0x10] sm:$0xff]  }
  0x5d   :  { %807 = vmatprep.subr.bf16.mxu0 %v1334_v37  ;;  %764 = vmatprep.subr.bf16.mxu1 %v1401_v55  ;;  %v1452_v37 = vld [vmem:[#allocation5 + $0x300] ss:$8 sps:$4 sm:$0xff]   ;;  %v1422_v55 = vld [vmem:[#allocation5 + $0x290] ss:$8 sps:$4 sm:$0xff]  }
  0x60   :  { %808 = vmatpush1.bf16.msra.mxu0 %v1336_v39  ;;  %765 = vmatpush1.bf16.msra.mxu1 %v1403_v58  ;;  %v1460_v39 = vld [vmem:[#allocation7 + $0x40] sm:$0xff]  }
  0x61   :  { %809 = vmatprep.subr.bf16.mxu0 %v1337_v44  ;;  %766 = vmatprep.subr.bf16.mxu1 %v1407_v59  ;;  %v1412_v44 = vld [vmem:[#allocation5 + $0x274] ss:$8 sps:$4 sm:$0xff]   ;;  %v1434_v59 = vld [vmem:[#allocation5 + $0x2b0] ss:$8 sps:$4 sm:$0xff]  }
  0x62   :  { %v1436_v58 = vld [vmem:[#allocation5 + $0x2b4] ss:$8 sps:$4 sm:$0xff]  }
  0x64   :  { %810 = vmatpush1.bf16.msra.mxu0 %v1339_v45  ;;  %767 = vmatpush1.bf16.msra.mxu1 %v1409_v63  ;;  %v246_v45 = vcombine.high %v230_v41, %v230_v41  ;;  %v1446_v63 = vld [vmem:[#allocation5 + $0x2d0] ss:$8 sps:$4 sm:$0xff]  }
  0x65   :  { %811 = vmatprep.subr.bf16.mxu0 %v1340_v48  ;;  %768 = vmatprep.subr.bf16.mxu1 %v1413_v0  ;;  %v1462_v48 = vld [vmem:[#allocation7 + $0x48] sm:$0xff]   ;;  %v1451_v0 = vld [vmem:[#allocation5 + $0x2e4] ss:$8 sps:$4 sm:$0xff]  }
  0x68   :  { %812 = vmatpush1.bf16.msra.mxu0 %v1342_v49  ;;  %769 = vmatpush1.bf16.msra.mxu1 %v1415_v4  ;;  %v1418_v49 = vld [vmem:[#allocation5 + $0x284] ss:$8 sps:$4 sm:$0xff]  }
  0x69   :  { %813 = vmatprep.subr.bf16.mxu0 %v1343_v52  ;;  %770 = vmatprep.subr.bf16.mxu1 %v1419_v5  ;;  %v1464_v52 = vld [vmem:[#allocation7 + $0x50] sm:$0xff]   ;;  %v1466_v4 = vld [vmem:[#allocation7 + $0x58] sm:$0xff]  }
  0x6a   :  { %v1467_v5 = vld [vmem:[#allocation7 + $0x18] sm:$0xff]  }
  0x6c   :  { %814 = vmatpush1.bf16.msra.mxu0 %v1345_v53  ;;  %771 = vmatpush1.bf16.msra.mxu1 %v1421_v9  ;;  %v1424_v53 = vld [vmem:[#allocation5 + $0x294] ss:$8 sps:$4 sm:$0xff]  }
  0x6d   :  { %815 = vmatprep.subr.bf16.mxu0 %v1346_v56  ;;  %772 = vmatprep.subr.bf16.mxu1 %v1425_v10  ;;  %v1430_v56 = vld [vmem:[#allocation5 + $0x2a4] ss:$8 sps:$4 sm:$0xff]   ;;  %v1471_v9 = vld [vmem:[#allocation7 + $0x28] sm:$0xff]  }
  0x6e   :  { %v1472_v10 = vld [vmem:[#allocation7 + $0x70] sm:$0xff]  }
  0x70   :  { %816 = vmatpush1.bf16.msra.mxu0 %v1348_v57  ;;  %773 = vmatpush1.bf16.msra.mxu1 %v1427_v14  ;;  %v1428_v57 = vld [vmem:[#allocation5 + $0x2a0] ss:$8 sps:$4 sm:$0xff]  }
  0x71   :  { %817 = vmatprep.subr.bf16.mxu0 %v1352_v60  ;;  %774 = vmatprep.subr.bf16.mxu1 %v1431_v15  ;;  %v1442_v60 = vld [vmem:[#allocation5 + $0x2c4] ss:$8 sps:$4 sm:$0xff]  }
  0x74   :  { %818 = vmatpush1.bf16.msra.mxu0 %v1354_v61  ;;  %775 = vmatpush1.bf16.msra.mxu1 %v1433_v20  ;;  %v1440_v61 = vld [vmem:[#allocation5 + $0x2c0] ss:$8 sps:$4 sm:$0xff]  }
  0x75   :  { %819 = vmatprep.subr.bf16.mxu0 %v1358_v1  ;;  %776 = vmatprep.subr.bf16.mxu1 %v1437_v23  ;;  %v1449_v1 = vld [vmem:[#allocation5 + $0x2e0] ss:$8 sps:$4 sm:$0xff]   ;;  %v169_v23 = vsub.s32 0, %v1650_v18  ;;  %v1242_v18 = vld [vmem:[%s1703_s4] ss:$0 sm:$0xff] }
  0x78   :  { %820 = vmatpush1.bf16.msra.mxu0 %v1360_v2  ;;  %777 = vmatpush1.bf16.msra.mxu1 %v1439_v28  ;;  %v1457_v2 = vld [vmem:[#allocation5 + $0x2f4] ss:$8 sps:$4 sm:$0xff]  }
  0x79   :  { %830 = vmatprep.subr.bf16.mxu0 %v1370_v6  ;;  %778 = vmatprep.subr.bf16.mxu1 %v1443_v30  ;;  %v1468_v6 = vld [vmem:[#allocation7 + $0x60] sm:$0xff]  }
  0x7b   :  { %822 = vmatmul.mubr.bf16.vlgmr.msra.gmra.mrb[0].mxu0 %v245_v8  ;;  %v1470_v8 = vld [vmem:[#allocation7 + $0x68] sm:$0xff]  }
  0x7c   :  { %831 = vmatpush1.bf16.msra.mxu0 %v1368_v7  ;;  %862 = vmatprep.mubr.bf16.mxu0 %v244_v31  ;;  %v1469_v7 = vld [vmem:[#allocation7 + $0x20] sm:$0xff]  }
  0x7d   :  { %832 = vmatprep.subr.bf16.mxu0 %v1376_v11  ;;  %779 = vmatpush1.bf16.msra.mxu1 %v1445_v32  ;;  %v1473_v11 = vld [vmem:[#allocation7 + $0x30] sm:$0xff]  }
  0x7e   :  { %871 = vmatprep.subr.bf16.mxu1 %v1454_v34 }
  0x80   :  { %833 = vmatpush1.bf16.msra.mxu0 %v1374_v12  ;;  %781 = vmatmul.mubr.bf16.vlgmr.msra.gmra.mrb[0].mxu1 %v1667_v3  ;;  %v1455_v3 = vld [vmem:[#allocation5 + $0x2f0] ss:$8 sps:$4 sm:$0xff]   ;;  %v1474_v12 = vld [vmem:[#allocation7 + $0x78] sm:$0xff]  }
  0x81   :  { %834 = vmatprep.subr.bf16.mxu0 %v1382_v13  ;;  %872 = vmatpush1.bf16.msra.mxu1 %v1452_v37  ;;  %v1475_v13 = vld [vmem:[#allocation7 + $0x38] sm:$0xff]  }
  0x82   :  { %903 = vmatprep.mubr.bf16.mxu1 %v1580_v42  ;;  %1261 = vmatprep.subr.bf16.mxu1 %v1460_v39 }
  0x84   :  { %835 = vmatpush1.bf16.msra.mxu0 %v1380_v19 }
  0x85   :  { %836 = vmatprep.subr.bf16.mxu0 %v1388_v24  ;;  %v165_v24 = vld [vmem:[%s1701_s2] sm:$0x3] }
  0x86   :  { %v174_v28 = vrot.slane %v165_v24, %v173_v26 }
  0x88   :  { %837 = vmatpush1.bf16.msra.mxu0 %v1386_v27  ;;  %1241 = vmatmul.mubr.msk.bf16.vlgmr.msra.gmra.mrb[4].mxu1 %vm744_vm0, %v246_v45  ;;  %v170_v27 = vrot.slane %v165_v24, %v169_v23 }
  0x89   :  { %838 = vmatprep.subr.bf16.mxu0 %v1394_v29  ;;  %1262 = vmatpush3.bf16.msra.mxu1 %v1461_v46 }
  0x8a   :  { %1263 = vmatprep.subr.bf16.mxu1 %v1462_v48 }
  0x8c   :  { %839 = vmatpush1.bf16.msra.mxu0 %v1392_v33 }
  0x8d   :  { %840 = vmatprep.subr.bf16.mxu0 %v1400_v35  ;;  %1264 = vmatpush3.bf16.msra.mxu1 %v1463_v50 }
  0x8e   :  { %1265 = vmatprep.subr.bf16.mxu1 %v1464_v52 }
  0x90   :  { %841 = vmatpush1.bf16.msra.mxu0 %v1398_v38 }
  0x91   :  { %842 = vmatprep.subr.bf16.mxu0 %v1406_v40  ;;  %1266 = vmatpush3.bf16.msra.mxu1 %v1465_v54 }
  0x92   :  { %1267 = vmatprep.subr.bf16.mxu1 %v1466_v4 }
  0x94   :  { %843 = vmatpush1.bf16.msra.mxu0 %v1404_v43 }
  0x95   :  { %844 = vmatprep.subr.bf16.mxu0 %v1412_v44  ;;  %1268 = vmatpush3.bf16.msra.mxu1 %v1467_v5 }
  0x96   :  { %1269 = vmatprep.subr.bf16.mxu1 %v1468_v6 }
  0x98   :  { %845 = vmatpush1.bf16.msra.mxu0 %v1410_v47 }
  0x99   :  { %846 = vmatprep.subr.bf16.mxu0 %v1418_v49  ;;  %1270 = vmatpush3.bf16.msra.mxu1 %v1469_v7 }
  0x9a   :  { %1271 = vmatprep.subr.bf16.mxu1 %v1470_v8 }
  0x9c   :  { %847 = vmatpush1.bf16.msra.mxu0 %v1416_v51 }
  0x9d   :  { %848 = vmatprep.subr.bf16.mxu0 %v1424_v53  ;;  %1272 = vmatpush3.bf16.msra.mxu1 %v1471_v9 }
  0x9e   :  { %1273 = vmatprep.subr.bf16.mxu1 %v1472_v10 }
  0xa0   :  { %849 = vmatpush1.bf16.msra.mxu0 %v1422_v55 }
  0xa1   :  { %850 = vmatprep.subr.bf16.mxu0 %v1430_v56  ;;  %1274 = vmatpush3.bf16.msra.mxu1 %v1473_v11 }
  0xa2   :  { %1275 = vmatprep.subr.bf16.mxu1 %v1474_v12 }
  0xa4   :  { %851 = vmatpush1.bf16.msra.mxu0 %v1428_v57 }
  0xa5   :  { %852 = vmatprep.subr.bf16.mxu0 %v1436_v58  ;;  %1276 = vmatpush3.bf16.msra.mxu1 %v1475_v13 }
  0xa8   :  { %853 = vmatpush1.bf16.msra.mxu0 %v1434_v59 }
  0xa9   :  { %854 = vmatprep.subr.bf16.mxu0 %v1442_v60 }
  0xac   :  { %855 = vmatpush1.bf16.msra.mxu0 %v1440_v61 }
  0xad   :  { %856 = vmatprep.subr.bf16.mxu0 %v1448_v62 }
  0xb0   :  { %857 = vmatpush1.bf16.msra.mxu0 %v1446_v63 }
  0xb1   :  { %858 = vmatprep.subr.bf16.mxu0 %v1451_v0 }
  0xb4   :  { %859 = vmatpush1.bf16.msra.mxu0 %v1449_v1 }
  0xb5   :  { %860 = vmatprep.subr.bf16.mxu0 %v1457_v2 }
  0xb8   :  { %861 = vmatpush1.bf16.msra.mxu0 %v1455_v3 }
  0xbb   :  { %863 = vmatmul.mubr.bf16.vlgmr.msra.gmra.mrb[0].mxu0 %v230_v41 }
 0x153   :  { %v782_v14 = vpop.f32.mrb[0].mxu1 }
 0x154   :  { %v784_v15 = vpop.f32.mrb[1].mxu1  ;;  %v783_v29 = vadd.f32 %v782_v14, %v170_v27 }
 0x155   :  { %v786_v16 = vpop.f32.mrb[2].mxu1  ;;  %v785_v30 = vadd.f32 %v784_v15, %v174_v28 }
 0x156   :  { %v787_v17 = vpop.f32.mrb[3].mxu1 }
 0x15b   :  { %v905_v19 = vpop.f32.mrb[4].mxu1 }
 0x15c   :  { %v907_v20 = vpop.f32.mrb[5].mxu1 }
 0x15d   :  { %v909_v21 = vpop.f32.mrb[6].mxu1 }
 0x15e   :  { %v910_v22 = vpop.f32.mrb[7].mxu1 }
 0x18e   :  { %v864_v31 = vpop.f32.mrb[0].mxu0 }
 0x18f   :  { %v1284_v32 = vadd.f32 %v864_v31, %v783_v29  ;;  %v866_v33 = vpop.f32.mrb[1].mxu0 }
 0x190   :  { %v1287_v34 = vadd.f32 %v866_v33, %v785_v30  ;;  %v868_v35 = vpop.f32.mrb[2].mxu0 }
 0x191   :  { %v1285_v36 = vadd.f32 %v1284_v32, %v905_v19  ;;  %v869_v37 = vpop.f32.mrb[3].mxu0 }
 0x192   :  { %v1288_v38 = vadd.f32 %v1287_v34, %v907_v20 }
 0x193   :  { %v912_v39 = vmax.f32 %v1285_v36, 0.0 }
 0x194   :  { %v913_v40 = vmax.f32 %v1288_v38, 0.0 }
 0x195   :  { %v914_v42 = vpack.c.bf16 %v912_v39, %v912_v39 }
 0x196   :  { %v915_v41 = vpack.c.bf16 %v913_v40, %v913_v40 }
 0x198   :  { %1083 = vmatprep.mubr.bf16.mxu1 %v915_v41 }
 0x199   :  { %1084 = vmatmul.mubr.bf16.vlgmr.msra.gmra.mrb[8].mxu1 %v914_v42 }
 0x26c   :  { %v1277_v43 = vpop.f32.mrb[8].mxu1 }
 0x26d   :  { %v1278_v44 = vpop.f32.mrb[9].mxu1 }
 0x26e   :  { %v1279_v45 = vadd.f32 %v1278_v44, %v1277_v43  ;;  %v1280_v46 = vpop.f32.mrb[10].mxu1 }
 0x26f   :  { %v1281_v47 = vpop.f32.mrb[11].mxu1 }
 0x270   :  { %v1086_v48 = vadd.f32 %v1279_v45, %v1242_v18 }
 0x272   :  { %v1091_v49 = vpack.c.bf16 %v1086_v48, %v1086_v48 }
 0x274   :  { %v1099_v50 = vrot.slane %v1091_v49, %v1653_v25 }
 0x276   :  { %v1100_v51 = vcombine.high %v1099_v50, %v1099_v50  ;;  %v1107_v52 = vrot.slane %v1099_v50, %v1653_v25  ;;  %1259 = vst.sshfl [vmem:[#allocation8] sm:$0x1 pattern:$0x73625140] %v1099_v50 }
 0x278   :  { %v1114_v53 = vrot.slane %v1100_v51, %v1653_v25  ;;  %v1115_v54 = vcombine.high %v1107_v52, %v1107_v52  ;;  %1260 = vst.sshfl [vmem:[#allocation8 + $0x1] sm:$0x1 pattern:$0x73625140] %v1100_v51 }
 0x27a   :  { %v1116_v55 = vcombine.high %v1114_v53, %v1114_v53  ;;  %1123 = vst [vmem:[#allocation8 + $0x2] sm:$0x1] %v1115_v54 }
 0x27c   :  { %1124 = vst [vmem:[#allocation8 + $0x3] sm:$0x1] %v1116_v55 }
 0x27d   :  { %1129 = vsyncadd [#allocation4], 48  ;;  %s1581_s4 = smov [#allocation8]  }
 0x27e   :  { %s1130_s11 = sshll.u32 %s1581_s4, 4  ;;  %s1131_s11 = int_to_ptr.vmem [resolvable:$true] %s1130_s11 }
 0x27f   :  { %s1542_s12 = scalar_lea.vmem %s1131_s11, 16  ;;  %s1546_s13 = scalar_lea.vmem %s1131_s11, 64 }
 0x280   :  { %p1543_p10 = scmp.ne.s32.totalorder %s1131_s11, %s1542_s12  ;;  %p1547_p11 = scmp.lt.s32.totalorder %s1131_s11, %s1131_s11 }
 0x281   :  { %p1548_p12 = scmp.lt.s32.totalorder %s1546_s13, %s1542_s12 }
 0x283   :  { %p1549_p13 = por %p1548_p12, %p1547_p11 }
 0x285   :  { %p1550_p0 = pnand %p1549_p13, %p1543_p10 }
 0x287   :  { %1553 = shalt.err (!%p1550_p0)
}
 0x288   :  { %s1554_s16 = scalar_lea.hbm %s1704_s5, 16 }
 0x289   :  { %p1555_p1 = scmp.ne.s32.totalorder %s1704_s5, %s1554_s16  ;;  %p1558_p2 = scmp.lt.u32.totalorder %s1554_s16, %s1704_s5 }
 0x28b   :  { %p1560_p3 = pnand %p1558_p2, %p1555_p1 }
 0x28d   :  { %1563 = shalt.err (!%p1560_p3)
}
 0x28e   :  { %s1582_s20 = smov 16   ;;  %s1583_s21 = smov 1  }
 0x28f   :  { %1136 = dma.vmem_to_hbm [thread:$0]  %s1131_s11, 16, %s1704_s5, [#allocation4], %s1582_s20, %s1582_s20, %s1583_s21  }
 0x290   :  { %1568 = dma.done.wait [#allocation4], 64  }
 0x291   :  { %1569 = vsyncadd [#allocation4], 4294967232 }
 0x292   :  { %1140 = vsyncpa [#allocation3], 1 }
 0x293   :  { %1141 = vsyncpa [#allocation6], 1 }
 0x294   :  { %1142 = vsyncpa [#allocation4], 1 }

</bundles_post_ra>
